<compile_context>
chip_gen: v6e
topology: v6e:2x2x1
jax: 0.10.0
libtpu: 0.0.40
codegen_flags: <defaults>
</compile_context>

<pallas_src>
import numpy as np

import jax
import jax.numpy as jnp
from jax import lax
from jax.experimental import pallas as pl
from jax.experimental.pallas import tpu as pltpu


# ---------------------------------------------------------------------------
# Architecture constants
# ---------------------------------------------------------------------------
K = 5                      # conv kernel size
IN_HW = 28                 # input spatial size
H1 = IN_HW - K + 1         # 24 : conv1 output H/W
P1 = H1 // 2               # 12 : pool1 output H/W
H2 = P1 - K + 1            # 8  : conv2 output H/W
P2 = H2 // 2               # 4  : pool2 output H/W
C1, C2 = 10, 20            # conv channels
F1, F2 = 50, 10            # fc sizes
SBLK = 128                 # lane stride between the two W-parity column blocks
NCOL1 = 2 * SBLK           # conv1 output columns: col = s*128 + co*12 + q  (j = 2q+s)
NCOL2 = 2 * SBLK           # conv2 output columns: col = s*128 + co*4  + Q  (J = 2Q+s)
W1COLS = C1 * P1           # 120 : pooled1 feature columns (ci*12 + q)
W2COLS = C2 * P2           # 80  : pooled2 feature columns (c*4 + Q)
BATCH_BLOCK = 8            # batch tile (multiple of 8 -> all in-kernel reshapes tile-aligned)


# ---------------------------------------------------------------------------
# Fused forward kernel (one grid step = one batch tile, everything in VMEM)
# ---------------------------------------------------------------------------
def _simple_cnn_kernel(x_ref, w1b_ref, b1c_ref, w2b_ref, b2c_ref,
                       wfc1_ref, bfc1_ref, wfc2_ref, bfc2_ref,
                       out_ref, p1_ref):
    f32, bf16 = jnp.float32, jnp.bfloat16
    tb = x_ref.shape[1]                       # x_ref: (28, tb, 28) = (H, n, W)

    # ---- conv1: 5 banded matmuls over the input width -------------------
    # rows = (i, n); cols = s*128 + co*12 + q  (output column j = 2q + s)
    c1 = jnp.zeros((H1 * tb, NCOL1), f32)
    for di in range(K):
        lhs = x_ref[di:di + H1].reshape(H1 * tb, IN_HW).astype(bf16)
        c1 = c1 + jnp.dot(lhs, w1b_ref[di], preferred_element_type=f32)
    c1 = c1 + b1c_ref[...]

    # ---- 2x2 maxpool + relu (W-pool = parity lane blocks, H-pool = row pairs)
    wpool1 = jnp.maximum(c1[:, 0:W1COLS], c1[:, SBLK:SBLK + W1COLS])    # (H1*tb, 120)
    wpool1 = wpool1.reshape(H1, tb, W1COLS)
    for p in range(P1):
        row = jnp.maximum(wpool1[2 * p], wpool1[2 * p + 1])
        p1_ref[p] = jnp.maximum(row, 0.0)                                # relu

    # ---- conv2 (Dropout2d: eval-mode identity) ---------------------------
    c2 = jnp.zeros((H2 * tb, NCOL2), f32)
    for di in range(K):
        lhs = p1_ref[di:di + H2].reshape(H2 * tb, W1COLS).astype(bf16)
        c2 = c2 + jnp.dot(lhs, w2b_ref[di], preferred_element_type=f32)
    c2 = c2 + b2c_ref[...]

    # ---- 2x2 maxpool + relu fused with fc1 (PyTorch flatten order in wfc1)
    wpool2 = jnp.maximum(c2[:, 0:W2COLS], c2[:, SBLK:SBLK + W2COLS])    # (H2*tb, 80)
    wpool2 = wpool2.reshape(H2, tb, W2COLS)
    acc = jnp.zeros((tb, F1), f32)
    for p in range(P2):
        row = jnp.maximum(jnp.maximum(wpool2[2 * p], wpool2[2 * p + 1]), 0.0)
        acc = acc + jnp.dot(row.astype(bf16), wfc1_ref[p], preferred_element_type=f32)

    # ---- fc1 relu -> (dropout: identity in eval) -> fc2 -> log_softmax ---
    h = jnp.maximum(acc + bfc1_ref[...], 0.0)
    logits = jnp.dot(h.astype(bf16), wfc2_ref[...], preferred_element_type=f32)
    logits = logits + bfc2_ref[...]
    m = jnp.max(logits, axis=-1, keepdims=True)
    s = logits - m
    lse = jnp.log(jnp.sum(jnp.exp(s), axis=-1, keepdims=True))
    out_ref[...] = s - lse


# ---------------------------------------------------------------------------
# One-time weight preparation (hoisted out of the per-call forward)
# ---------------------------------------------------------------------------
def prepare_params(params):
    f32, bf16 = jnp.float32, jnp.bfloat16
    w1 = params["w1"].astype(f32)       # (10, 1, 5, 5)  torch layout
    b1 = params["b1"].astype(f32)
    w2 = params["w2"].astype(f32)       # (20, 10, 5, 5)
    b2 = params["b2"].astype(f32)
    fc1_w = params["fc1_w"].astype(f32)  # (50, 320)
    fc1_b = params["fc1_b"].astype(f32)
    fc2_w = params["fc2_w"].astype(f32)  # (10, 50)
    fc2_b = params["fc2_b"].astype(f32)

    # conv1 banded matrices: B1[di, 2q+s+dj, s*128 + co*12 + q] = w1[co, 0, di, dj]
    di, dj, co, q, s = np.meshgrid(np.arange(K), np.arange(K), np.arange(C1),
                                   np.arange(P1), np.arange(2), indexing="ij")
    rows = (2 * q + s + dj).ravel()
    cols = (s * SBLK + co * P1 + q).ravel()
    vals = w1[co.ravel(), 0, di.ravel(), dj.ravel()]
    B1 = jnp.zeros((K, IN_HW, NCOL1), f32).at[di.ravel(), rows, cols].set(vals)

    b1c = jnp.concatenate([jnp.repeat(b1, P1), jnp.zeros((SBLK - W1COLS,), f32)])
    b1c = jnp.tile(b1c, 2)[None, :]                                      # (1, 256)

    # conv2 banded matrices: B2[di, ci*12 + 2Q+s+dj, s*128 + co*4 + Q] = w2[co, ci, di, dj]
    di, dj, ci, co, Q, s = np.meshgrid(np.arange(K), np.arange(K), np.arange(C1),
                                       np.arange(C2), np.arange(P2), np.arange(2),
                                       indexing="ij")
    rows = (ci * P1 + 2 * Q + s + dj).ravel()
    cols = (s * SBLK + co * P2 + Q).ravel()
    vals = w2[co.ravel(), ci.ravel(), di.ravel(), dj.ravel()]
    B2 = jnp.zeros((K, W1COLS, NCOL2), f32).at[di.ravel(), rows, cols].set(vals)

    b2c = jnp.concatenate([jnp.repeat(b2, P2), jnp.zeros((SBLK - W2COLS,), f32)])
    b2c = jnp.tile(b2c, 2)[None, :]                                      # (1, 256)

    # fc1 weight regrouped so torch's x.view(-1, 320) (C, H, W) order is built in:
    # Wfc1[P, c*4 + Q, :] = fc1_w[:, c*16 + P*4 + Q]
    wfc1 = fc1_w.T.reshape(C2, P2, P2, F1).transpose(1, 0, 2, 3).reshape(P2, W2COLS, F1)

    return {
        "B1": B1.astype(bf16), "b1c": b1c,
        "B2": B2.astype(bf16), "b2c": b2c,
        "Wfc1": wfc1.astype(bf16), "bfc1": fc1_b[None, :],
        "Wfc2": fc2_w.T.astype(bf16), "bfc2": fc2_b[None, :],
    }


# ---------------------------------------------------------------------------
# Forward pass (single fused pallas_call, grid over batch tiles)
# ---------------------------------------------------------------------------
@jax.jit
def simple_cnn_forward(x_nchw, prepared):
    n = x_nchw.shape[0]
    x = x_nchw.reshape(n, IN_HW, IN_HW).astype(jnp.float32)
    npad = ((n + BATCH_BLOCK - 1) // BATCH_BLOCK) * BATCH_BLOCK
    if npad != n:
        x = jnp.pad(x, ((0, npad - n), (0, 0), (0, 0)))
    xt = jnp.transpose(x, (1, 0, 2))            # (28, npad, 28): batch on sublanes

    full = lambda shape: pl.BlockSpec(shape, lambda i, _nd=len(shape): (0,) * _nd)

    out = pl.pallas_call(
        _simple_cnn_kernel,
        out_shape=jax.ShapeDtypeStruct((npad, F2), jnp.float32),
        grid=(npad // BATCH_BLOCK,),
        in_specs=[
            pl.BlockSpec((IN_HW, BATCH_BLOCK, IN_HW), lambda i: (0, i, 0)),
            full((K, IN_HW, NCOL1)),
            full((1, NCOL1)),
            full((K, W1COLS, NCOL2)),
            full((1, NCOL2)),
            full((P2, W2COLS, F1)),
            full((1, F1)),
            full((F1, F2)),
            full((1, F2)),
        ],
        out_specs=pl.BlockSpec((BATCH_BLOCK, F2), lambda i: (i, 0)),
        scratch_shapes=[pltpu.VMEM((P1, BATCH_BLOCK, W1COLS), jnp.float32)],
        compiler_params=pltpu.CompilerParams(
            dimension_semantics=("parallel",),
        ),
    )(xt, prepared["B1"], prepared["b1c"], prepared["B2"], prepared["b2c"],
      prepared["Wfc1"], prepared["bfc1"], prepared["Wfc2"], prepared["bfc2"])
    return out[:n]


# ---------------------------------------------------------------------------
# Pure-JAX reference (eval-mode PyTorch semantics) + param init
# ---------------------------------------------------------------------------
def reference_forward(x_nchw, params):
    x = x_nchw.astype(jnp.float32)

    def conv(z, w, b):
        y = lax.conv_general_dilated(z, w, window_strides=(1, 1), padding="VALID",
                                     dimension_numbers=("NCHW", "OIHW", "NCHW"))
        return y + b[None, :, None, None]

    def pool_relu(y):
        m = jnp.maximum(jnp.maximum(y[:, :, 0::2, 0::2], y[:, :, 0::2, 1::2]),
                        jnp.maximum(y[:, :, 1::2, 0::2], y[:, :, 1::2, 1::2]))
        return jnp.maximum(m, 0.0)

    y = pool_relu(conv(x, params["w1"], params["b1"]))
    y = pool_relu(conv(y, params["w2"], params["b2"]))     # Dropout2d: eval identity
    y = y.reshape(y.shape[0], -1)                           # (N, 320), NCHW flatten
    h = jnp.maximum(y @ params["fc1_w"].T + params["fc1_b"], 0.0)
    logits = h @ params["fc2_w"].T + params["fc2_b"]
    return jax.nn.log_softmax(logits, axis=-1)


def init_params(key):
    ks = jax.random.split(key, 8)
    scale = 0.05
    return {
        "w1": scale * jax.random.normal(ks[0], (10, 1, 5, 5), jnp.float32),
        "b1": scale * jax.random.normal(ks[1], (10,), jnp.float32),
        "w2": scale * jax.random.normal(ks[2], (20, 10, 5, 5), jnp.float32),
        "b2": scale * jax.random.normal(ks[3], (20,), jnp.float32),
        "fc1_w": scale * jax.random.normal(ks[4], (50, 320), jnp.float32),
        "fc1_b": scale * jax.random.normal(ks[5], (50,), jnp.float32),
        "fc2_w": scale * jax.random.normal(ks[6], (10, 50), jnp.float32),
        "fc2_b": scale * jax.random.normal(ks[7], (10,), jnp.float32),
    }


if __name__ == "__main__":
    key = jax.random.PRNGKey(0)
    k_x, k_p = jax.random.split(key)
    # 28x28 input is required by the architecture (20 * 4 * 4 = 320 flatten).
    x = jax.random.normal(k_x, (2, 1, 28, 28), jnp.float32)
    params = init_params(k_p)

    prepared = prepare_params(params)          # one-time weight repack (hoisted)
    out = simple_cnn_forward(x, prepared)
    out = jax.block_until_ready(out)

    assert out.shape == (2, 10), out.shape
    assert jnp.allclose(jnp.sum(jnp.exp(out), axis=-1), 1.0, atol=1e-4)

    ref = reference_forward(x, params)
    err = float(jnp.max(jnp.abs(out - ref)))
    assert err < 5e-2, f"max |pallas - reference| = {err}"

    print("KERNEL_OK")
</pallas_src>

<mosaic_0001>
module attributes {stable_mosaic.version = 11 : i64} {
  func.func @_simple_cnn_kernel(%arg0: i32, %arg1: memref<28x8x28xf32, #tpu.memory_space<vmem>>, %arg2: memref<5x28x256xbf16, #tpu.memory_space<vmem>>, %arg3: memref<1x256xf32, #tpu.memory_space<vmem>>, %arg4: memref<5x120x256xbf16, #tpu.memory_space<vmem>>, %arg5: memref<1x256xf32, #tpu.memory_space<vmem>>, %arg6: memref<4x80x50xbf16, #tpu.memory_space<vmem>>, %arg7: memref<1x50xf32, #tpu.memory_space<vmem>>, %arg8: memref<50x10xbf16, #tpu.memory_space<vmem>>, %arg9: memref<1x10xf32, #tpu.memory_space<vmem>>, %arg10: memref<8x10xf32, #tpu.memory_space<vmem>>, %arg11: memref<12x8x120xf32, #tpu.memory_space<vmem>>) attributes {dimension_semantics = [#tpu.dimension_semantics<parallel>], iteration_bounds = array<i64: 1>, scalar_prefetch = 0 : i64, scratch_operands = 1 : i64, tpu.core_type = #tpu.core_type<tc>, window_params = [{transform_indices = @transform_0, window_bounds = array<i64: 28, 8, 28>}, {pipeline_mode = #tpu.pipeline_mode<synchronous>, transform_indices = @transform_1, window_bounds = array<i64: 5, 28, 256>}, {pipeline_mode = #tpu.pipeline_mode<synchronous>, transform_indices = @transform_2, window_bounds = array<i64: 1, 256>}, {pipeline_mode = #tpu.pipeline_mode<synchronous>, transform_indices = @transform_3, window_bounds = array<i64: 5, 120, 256>}, {pipeline_mode = #tpu.pipeline_mode<synchronous>, transform_indices = @transform_4, window_bounds = array<i64: 1, 256>}, {pipeline_mode = #tpu.pipeline_mode<synchronous>, transform_indices = @transform_5, window_bounds = array<i64: 4, 80, 50>}, {pipeline_mode = #tpu.pipeline_mode<synchronous>, transform_indices = @transform_6, window_bounds = array<i64: 1, 50>}, {pipeline_mode = #tpu.pipeline_mode<synchronous>, transform_indices = @transform_7, window_bounds = array<i64: 50, 10>}, {pipeline_mode = #tpu.pipeline_mode<synchronous>, transform_indices = @transform_8, window_bounds = array<i64: 1, 10>}, {transform_indices = @transform_9, window_bounds = array<i64: 8, 10>}]} {
    %cst = arith.constant 0.000000e+00 : f32
    %0 = vector.broadcast %cst : f32 to vector<192x256xf32>
    %c0 = arith.constant 0 : index
    %c0_0 = arith.constant 0 : index
    %c0_1 = arith.constant 0 : index
    %1 = vector.load %arg1[%c0, %c0_0, %c0_1] : memref<28x8x28xf32, #tpu.memory_space<vmem>>, vector<24x8x28xf32>
    %2 = vector.shape_cast %1 : vector<24x8x28xf32> to vector<192x28xf32>
    %3 = arith.truncf %2 : vector<192x28xf32> to vector<192x28xbf16>
    %c0_2 = arith.constant 0 : index
    %c0_3 = arith.constant 0 : index
    %c0_4 = arith.constant 0 : index
    %4 = vector.load %arg2[%c0_2, %c0_3, %c0_4] : memref<5x28x256xbf16, #tpu.memory_space<vmem>>, vector<1x28x256xbf16>
    %5 = vector.shape_cast %4 : vector<1x28x256xbf16> to vector<28x256xbf16>
    %cst_5 = arith.constant dense<0.000000e+00> : vector<192x256xf32>
    %6 = tpu.matmul %3, %5, %cst_5 {dimension_numbers = #tpu.dot_dimension_numbers<[1], [0], [0], [1], [0, 0, 1, 1], [], []>} : vector<192x28xbf16>, vector<28x256xbf16>, vector<192x256xf32> -> vector<192x256xf32>
    %7 = arith.addf %0, %6 : vector<192x256xf32>
    %c1 = arith.constant 1 : index
    %c0_6 = arith.constant 0 : index
    %c0_7 = arith.constant 0 : index
    %8 = vector.load %arg1[%c1, %c0_6, %c0_7] : memref<28x8x28xf32, #tpu.memory_space<vmem>>, vector<24x8x28xf32>
    %9 = vector.shape_cast %8 : vector<24x8x28xf32> to vector<192x28xf32>
    %10 = arith.truncf %9 : vector<192x28xf32> to vector<192x28xbf16>
    %c1_8 = arith.constant 1 : index
    %c0_9 = arith.constant 0 : index
    %c0_10 = arith.constant 0 : index
    %11 = vector.load %arg2[%c1_8, %c0_9, %c0_10] : memref<5x28x256xbf16, #tpu.memory_space<vmem>>, vector<1x28x256xbf16>
    %12 = vector.shape_cast %11 : vector<1x28x256xbf16> to vector<28x256xbf16>
    %cst_11 = arith.constant dense<0.000000e+00> : vector<192x256xf32>
    %13 = tpu.matmul %10, %12, %cst_11 {dimension_numbers = #tpu.dot_dimension_numbers<[1], [0], [0], [1], [0, 0, 1, 1], [], []>} : vector<192x28xbf16>, vector<28x256xbf16>, vector<192x256xf32> -> vector<192x256xf32>
    %14 = arith.addf %7, %13 : vector<192x256xf32>
    %c2 = arith.constant 2 : index
    %c0_12 = arith.constant 0 : index
    %c0_13 = arith.constant 0 : index
    %15 = vector.load %arg1[%c2, %c0_12, %c0_13] : memref<28x8x28xf32, #tpu.memory_space<vmem>>, vector<24x8x28xf32>
    %16 = vector.shape_cast %15 : vector<24x8x28xf32> to vector<192x28xf32>
    %17 = arith.truncf %16 : vector<192x28xf32> to vector<192x28xbf16>
    %c2_14 = arith.constant 2 : index
    %c0_15 = arith.constant 0 : index
    %c0_16 = arith.constant 0 : index
    %18 = vector.load %arg2[%c2_14, %c0_15, %c0_16] : memref<5x28x256xbf16, #tpu.memory_space<vmem>>, vector<1x28x256xbf16>
    %19 = vector.shape_cast %18 : vector<1x28x256xbf16> to vector<28x256xbf16>
    %cst_17 = arith.constant dense<0.000000e+00> : vector<192x256xf32>
    %20 = tpu.matmul %17, %19, %cst_17 {dimension_numbers = #tpu.dot_dimension_numbers<[1], [0], [0], [1], [0, 0, 1, 1], [], []>} : vector<192x28xbf16>, vector<28x256xbf16>, vector<192x256xf32> -> vector<192x256xf32>
    %21 = arith.addf %14, %20 : vector<192x256xf32>
    %c3 = arith.constant 3 : index
    %c0_18 = arith.constant 0 : index
    %c0_19 = arith.constant 0 : index
    %22 = vector.load %arg1[%c3, %c0_18, %c0_19] : memref<28x8x28xf32, #tpu.memory_space<vmem>>, vector<24x8x28xf32>
    %23 = vector.shape_cast %22 : vector<24x8x28xf32> to vector<192x28xf32>
    %24 = arith.truncf %23 : vector<192x28xf32> to vector<192x28xbf16>
    %c3_20 = arith.constant 3 : index
    %c0_21 = arith.constant 0 : index
    %c0_22 = arith.constant 0 : index
    %25 = vector.load %arg2[%c3_20, %c0_21, %c0_22] : memref<5x28x256xbf16, #tpu.memory_space<vmem>>, vector<1x28x256xbf16>
    %26 = vector.shape_cast %25 : vector<1x28x256xbf16> to vector<28x256xbf16>
    %cst_23 = arith.constant dense<0.000000e+00> : vector<192x256xf32>
    %27 = tpu.matmul %24, %26, %cst_23 {dimension_numbers = #tpu.dot_dimension_numbers<[1], [0], [0], [1], [0, 0, 1, 1], [], []>} : vector<192x28xbf16>, vector<28x256xbf16>, vector<192x256xf32> -> vector<192x256xf32>
    %28 = arith.addf %21, %27 : vector<192x256xf32>
    %c4 = arith.constant 4 : index
    %c0_24 = arith.constant 0 : index
    %c0_25 = arith.constant 0 : index
    %29 = vector.load %arg1[%c4, %c0_24, %c0_25] : memref<28x8x28xf32, #tpu.memory_space<vmem>>, vector<24x8x28xf32>
    %30 = vector.shape_cast %29 : vector<24x8x28xf32> to vector<192x28xf32>
    %31 = arith.truncf %30 : vector<192x28xf32> to vector<192x28xbf16>
    %c4_26 = arith.constant 4 : index
    %c0_27 = arith.constant 0 : index
    %c0_28 = arith.constant 0 : index
    %32 = vector.load %arg2[%c4_26, %c0_27, %c0_28] : memref<5x28x256xbf16, #tpu.memory_space<vmem>>, vector<1x28x256xbf16>
    %33 = vector.shape_cast %32 : vector<1x28x256xbf16> to vector<28x256xbf16>
    %cst_29 = arith.constant dense<0.000000e+00> : vector<192x256xf32>
    %34 = tpu.matmul %31, %33, %cst_29 {dimension_numbers = #tpu.dot_dimension_numbers<[1], [0], [0], [1], [0, 0, 1, 1], [], []>} : vector<192x28xbf16>, vector<28x256xbf16>, vector<192x256xf32> -> vector<192x256xf32>
    %35 = arith.addf %28, %34 : vector<192x256xf32>
    %c0_30 = arith.constant 0 : index
    %c0_31 = arith.constant 0 : index
    %36 = vector.load %arg3[%c0_30, %c0_31] : memref<1x256xf32, #tpu.memory_space<vmem>>, vector<1x256xf32>
    %37 = vector.broadcast %36 : vector<1x256xf32> to vector<192x256xf32>
    %38 = arith.addf %35, %37 : vector<192x256xf32>
    %39 = vector.extract_strided_slice %38 {offsets = [0, 0], sizes = [192, 120], strides = [1, 1]} : vector<192x256xf32> to vector<192x120xf32>
    %40 = vector.extract_strided_slice %38 {offsets = [0, 128], sizes = [192, 120], strides = [1, 1]} : vector<192x256xf32> to vector<192x120xf32>
    %41 = arith.maximumf %39, %40 : vector<192x120xf32>
    %42 = vector.shape_cast %41 : vector<192x120xf32> to vector<24x8x120xf32>
    %43 = vector.extract_strided_slice %42 {offsets = [0, 0, 0], sizes = [1, 8, 120], strides = [1, 1, 1]} : vector<24x8x120xf32> to vector<1x8x120xf32>
    %44 = vector.shape_cast %43 : vector<1x8x120xf32> to vector<8x120xf32>
    %45 = vector.extract_strided_slice %42 {offsets = [1, 0, 0], sizes = [1, 8, 120], strides = [1, 1, 1]} : vector<24x8x120xf32> to vector<1x8x120xf32>
    %46 = vector.shape_cast %45 : vector<1x8x120xf32> to vector<8x120xf32>
    %47 = arith.maximumf %44, %46 : vector<8x120xf32>
    %cst_32 = arith.constant 0.000000e+00 : f32
    %48 = vector.broadcast %cst_32 : f32 to vector<8x120xf32>
    %49 = arith.maximumf %47, %48 : vector<8x120xf32>
    %c0_33 = arith.constant 0 : index
    %c0_34 = arith.constant 0 : index
    %c0_35 = arith.constant 0 : index
    %50 = vector.load %arg11[%c0_33, %c0_34, %c0_35] : memref<12x8x120xf32, #tpu.memory_space<vmem>>, vector<1x8x120xf32>
    %51 = vector.shape_cast %50 : vector<1x8x120xf32> to vector<8x120xf32>
    %52 = vector.shape_cast %49 : vector<8x120xf32> to vector<1x8x120xf32>
    tpu.vector_store %arg11[%c0_33, %c0_34, %c0_35], %52 {strides = array<i32>} : memref<12x8x120xf32, #tpu.memory_space<vmem>>, vector<1x8x120xf32>,
    %53 = vector.extract_strided_slice %42 {offsets = [2, 0, 0], sizes = [1, 8, 120], strides = [1, 1, 1]} : vector<24x8x120xf32> to vector<1x8x120xf32>
    %54 = vector.shape_cast %53 : vector<1x8x120xf32> to vector<8x120xf32>
    %55 = vector.extract_strided_slice %42 {offsets = [3, 0, 0], sizes = [1, 8, 120], strides = [1, 1, 1]} : vector<24x8x120xf32> to vector<1x8x120xf32>
    %56 = vector.shape_cast %55 : vector<1x8x120xf32> to vector<8x120xf32>
    %57 = arith.maximumf %54, %56 : vector<8x120xf32>
    %cst_36 = arith.constant 0.000000e+00 : f32
    %58 = vector.broadcast %cst_36 : f32 to vector<8x120xf32>
    %59 = arith.maximumf %57, %58 : vector<8x120xf32>
    %c1_37 = arith.constant 1 : index
    %c0_38 = arith.constant 0 : index
    %c0_39 = arith.constant 0 : index
    %60 = vector.load %arg11[%c1_37, %c0_38, %c0_39] : memref<12x8x120xf32, #tpu.memory_space<vmem>>, vector<1x8x120xf32>
    %61 = vector.shape_cast %60 : vector<1x8x120xf32> to vector<8x120xf32>
    %62 = vector.shape_cast %59 : vector<8x120xf32> to vector<1x8x120xf32>
    tpu.vector_store %arg11[%c1_37, %c0_38, %c0_39], %62 {strides = array<i32>} : memref<12x8x120xf32, #tpu.memory_space<vmem>>, vector<1x8x120xf32>,
    %63 = vector.extract_strided_slice %42 {offsets = [4, 0, 0], sizes = [1, 8, 120], strides = [1, 1, 1]} : vector<24x8x120xf32> to vector<1x8x120xf32>
    %64 = vector.shape_cast %63 : vector<1x8x120xf32> to vector<8x120xf32>
    %65 = vector.extract_strided_slice %42 {offsets = [5, 0, 0], sizes = [1, 8, 120], strides = [1, 1, 1]} : vector<24x8x120xf32> to vector<1x8x120xf32>
    %66 = vector.shape_cast %65 : vector<1x8x120xf32> to vector<8x120xf32>
    %67 = arith.maximumf %64, %66 : vector<8x120xf32>
    %cst_40 = arith.constant 0.000000e+00 : f32
    %68 = vector.broadcast %cst_40 : f32 to vector<8x120xf32>
    %69 = arith.maximumf %67, %68 : vector<8x120xf32>
    %c2_41 = arith.constant 2 : index
    %c0_42 = arith.constant 0 : index
    %c0_43 = arith.constant 0 : index
    %70 = vector.load %arg11[%c2_41, %c0_42, %c0_43] : memref<12x8x120xf32, #tpu.memory_space<vmem>>, vector<1x8x120xf32>
    %71 = vector.shape_cast %70 : vector<1x8x120xf32> to vector<8x120xf32>
    %72 = vector.shape_cast %69 : vector<8x120xf32> to vector<1x8x120xf32>
    tpu.vector_store %arg11[%c2_41, %c0_42, %c0_43], %72 {strides = array<i32>} : memref<12x8x120xf32, #tpu.memory_space<vmem>>, vector<1x8x120xf32>,
    %73 = vector.extract_strided_slice %42 {offsets = [6, 0, 0], sizes = [1, 8, 120], strides = [1, 1, 1]} : vector<24x8x120xf32> to vector<1x8x120xf32>
    %74 = vector.shape_cast %73 : vector<1x8x120xf32> to vector<8x120xf32>
    %75 = vector.extract_strided_slice %42 {offsets = [7, 0, 0], sizes = [1, 8, 120], strides = [1, 1, 1]} : vector<24x8x120xf32> to vector<1x8x120xf32>
    %76 = vector.shape_cast %75 : vector<1x8x120xf32> to vector<8x120xf32>
    %77 = arith.maximumf %74, %76 : vector<8x120xf32>
    %cst_44 = arith.constant 0.000000e+00 : f32
    %78 = vector.broadcast %cst_44 : f32 to vector<8x120xf32>
    %79 = arith.maximumf %77, %78 : vector<8x120xf32>
    %c3_45 = arith.constant 3 : index
    %c0_46 = arith.constant 0 : index
    %c0_47 = arith.constant 0 : index
    %80 = vector.load %arg11[%c3_45, %c0_46, %c0_47] : memref<12x8x120xf32, #tpu.memory_space<vmem>>, vector<1x8x120xf32>
    %81 = vector.shape_cast %80 : vector<1x8x120xf32> to vector<8x120xf32>
    %82 = vector.shape_cast %79 : vector<8x120xf32> to vector<1x8x120xf32>
    tpu.vector_store %arg11[%c3_45, %c0_46, %c0_47], %82 {strides = array<i32>} : memref<12x8x120xf32, #tpu.memory_space<vmem>>, vector<1x8x120xf32>,
    %83 = vector.extract_strided_slice %42 {offsets = [8, 0, 0], sizes = [1, 8, 120], strides = [1, 1, 1]} : vector<24x8x120xf32> to vector<1x8x120xf32>
    %84 = vector.shape_cast %83 : vector<1x8x120xf32> to vector<8x120xf32>
    %85 = vector.extract_strided_slice %42 {offsets = [9, 0, 0], sizes = [1, 8, 120], strides = [1, 1, 1]} : vector<24x8x120xf32> to vector<1x8x120xf32>
    %86 = vector.shape_cast %85 : vector<1x8x120xf32> to vector<8x120xf32>
    %87 = arith.maximumf %84, %86 : vector<8x120xf32>
    %cst_48 = arith.constant 0.000000e+00 : f32
    %88 = vector.broadcast %cst_48 : f32 to vector<8x120xf32>
    %89 = arith.maximumf %87, %88 : vector<8x120xf32>
    %c4_49 = arith.constant 4 : index
    %c0_50 = arith.constant 0 : index
    %c0_51 = arith.constant 0 : index
    %90 = vector.load %arg11[%c4_49, %c0_50, %c0_51] : memref<12x8x120xf32, #tpu.memory_space<vmem>>, vector<1x8x120xf32>
    %91 = vector.shape_cast %90 : vector<1x8x120xf32> to vector<8x120xf32>
    %92 = vector.shape_cast %89 : vector<8x120xf32> to vector<1x8x120xf32>
    tpu.vector_store %arg11[%c4_49, %c0_50, %c0_51], %92 {strides = array<i32>} : memref<12x8x120xf32, #tpu.memory_space<vmem>>, vector<1x8x120xf32>,
    %93 = vector.extract_strided_slice %42 {offsets = [10, 0, 0], sizes = [1, 8, 120], strides = [1, 1, 1]} : vector<24x8x120xf32> to vector<1x8x120xf32>
    %94 = vector.shape_cast %93 : vector<1x8x120xf32> to vector<8x120xf32>
    %95 = vector.extract_strided_slice %42 {offsets = [11, 0, 0], sizes = [1, 8, 120], strides = [1, 1, 1]} : vector<24x8x120xf32> to vector<1x8x120xf32>
    %96 = vector.shape_cast %95 : vector<1x8x120xf32> to vector<8x120xf32>
    %97 = arith.maximumf %94, %96 : vector<8x120xf32>
    %cst_52 = arith.constant 0.000000e+00 : f32
    %98 = vector.broadcast %cst_52 : f32 to vector<8x120xf32>
    %99 = arith.maximumf %97, %98 : vector<8x120xf32>
    %c5 = arith.constant 5 : index
    %c0_53 = arith.constant 0 : index
    %c0_54 = arith.constant 0 : index
    %100 = vector.load %arg11[%c5, %c0_53, %c0_54] : memref<12x8x120xf32, #tpu.memory_space<vmem>>, vector<1x8x120xf32>
    %101 = vector.shape_cast %100 : vector<1x8x120xf32> to vector<8x120xf32>
    %102 = vector.shape_cast %99 : vector<8x120xf32> to vector<1x8x120xf32>
    tpu.vector_store %arg11[%c5, %c0_53, %c0_54], %102 {strides = array<i32>} : memref<12x8x120xf32, #tpu.memory_space<vmem>>, vector<1x8x120xf32>,
    %103 = vector.extract_strided_slice %42 {offsets = [12, 0, 0], sizes = [1, 8, 120], strides = [1, 1, 1]} : vector<24x8x120xf32> to vector<1x8x120xf32>
    %104 = vector.shape_cast %103 : vector<1x8x120xf32> to vector<8x120xf32>
    %105 = vector.extract_strided_slice %42 {offsets = [13, 0, 0], sizes = [1, 8, 120], strides = [1, 1, 1]} : vector<24x8x120xf32> to vector<1x8x120xf32>
    %106 = vector.shape_cast %105 : vector<1x8x120xf32> to vector<8x120xf32>
    %107 = arith.maximumf %104, %106 : vector<8x120xf32>
    %cst_55 = arith.constant 0.000000e+00 : f32
    %108 = vector.broadcast %cst_55 : f32 to vector<8x120xf32>
    %109 = arith.maximumf %107, %108 : vector<8x120xf32>
    %c6 = arith.constant 6 : index
    %c0_56 = arith.constant 0 : index
    %c0_57 = arith.constant 0 : index
    %110 = vector.load %arg11[%c6, %c0_56, %c0_57] : memref<12x8x120xf32, #tpu.memory_space<vmem>>, vector<1x8x120xf32>
    %111 = vector.shape_cast %110 : vector<1x8x120xf32> to vector<8x120xf32>
    %112 = vector.shape_cast %109 : vector<8x120xf32> to vector<1x8x120xf32>
    tpu.vector_store %arg11[%c6, %c0_56, %c0_57], %112 {strides = array<i32>} : memref<12x8x120xf32, #tpu.memory_space<vmem>>, vector<1x8x120xf32>,
    %113 = vector.extract_strided_slice %42 {offsets = [14, 0, 0], sizes = [1, 8, 120], strides = [1, 1, 1]} : vector<24x8x120xf32> to vector<1x8x120xf32>
    %114 = vector.shape_cast %113 : vector<1x8x120xf32> to vector<8x120xf32>
    %115 = vector.extract_strided_slice %42 {offsets = [15, 0, 0], sizes = [1, 8, 120], strides = [1, 1, 1]} : vector<24x8x120xf32> to vector<1x8x120xf32>
    %116 = vector.shape_cast %115 : vector<1x8x120xf32> to vector<8x120xf32>
    %117 = arith.maximumf %114, %116 : vector<8x120xf32>
    %cst_58 = arith.constant 0.000000e+00 : f32
    %118 = vector.broadcast %cst_58 : f32 to vector<8x120xf32>
    %119 = arith.maximumf %117, %118 : vector<8x120xf32>
    %c7 = arith.constant 7 : index
    %c0_59 = arith.constant 0 : index
    %c0_60 = arith.constant 0 : index
    %120 = vector.load %arg11[%c7, %c0_59, %c0_60] : memref<12x8x120xf32, #tpu.memory_space<vmem>>, vector<1x8x120xf32>
    %121 = vector.shape_cast %120 : vector<1x8x120xf32> to vector<8x120xf32>
    %122 = vector.shape_cast %119 : vector<8x120xf32> to vector<1x8x120xf32>
    tpu.vector_store %arg11[%c7, %c0_59, %c0_60], %122 {strides = array<i32>} : memref<12x8x120xf32, #tpu.memory_space<vmem>>, vector<1x8x120xf32>,
    %123 = vector.extract_strided_slice %42 {offsets = [16, 0, 0], sizes = [1, 8, 120], strides = [1, 1, 1]} : vector<24x8x120xf32> to vector<1x8x120xf32>
    %124 = vector.shape_cast %123 : vector<1x8x120xf32> to vector<8x120xf32>
    %125 = vector.extract_strided_slice %42 {offsets = [17, 0, 0], sizes = [1, 8, 120], strides = [1, 1, 1]} : vector<24x8x120xf32> to vector<1x8x120xf32>
    %126 = vector.shape_cast %125 : vector<1x8x120xf32> to vector<8x120xf32>
    %127 = arith.maximumf %124, %126 : vector<8x120xf32>
    %cst_61 = arith.constant 0.000000e+00 : f32
    %128 = vector.broadcast %cst_61 : f32 to vector<8x120xf32>
    %129 = arith.maximumf %127, %128 : vector<8x120xf32>
    %c8 = arith.constant 8 : index
    %c0_62 = arith.constant 0 : index
    %c0_63 = arith.constant 0 : index
    %130 = vector.load %arg11[%c8, %c0_62, %c0_63] : memref<12x8x120xf32, #tpu.memory_space<vmem>>, vector<1x8x120xf32>
    %131 = vector.shape_cast %130 : vector<1x8x120xf32> to vector<8x120xf32>
    %132 = vector.shape_cast %129 : vector<8x120xf32> to vector<1x8x120xf32>
    tpu.vector_store %arg11[%c8, %c0_62, %c0_63], %132 {strides = array<i32>} : memref<12x8x120xf32, #tpu.memory_space<vmem>>, vector<1x8x120xf32>,
    %133 = vector.extract_strided_slice %42 {offsets = [18, 0, 0], sizes = [1, 8, 120], strides = [1, 1, 1]} : vector<24x8x120xf32> to vector<1x8x120xf32>
    %134 = vector.shape_cast %133 : vector<1x8x120xf32> to vector<8x120xf32>
    %135 = vector.extract_strided_slice %42 {offsets = [19, 0, 0], sizes = [1, 8, 120], strides = [1, 1, 1]} : vector<24x8x120xf32> to vector<1x8x120xf32>
    %136 = vector.shape_cast %135 : vector<1x8x120xf32> to vector<8x120xf32>
    %137 = arith.maximumf %134, %136 : vector<8x120xf32>
    %cst_64 = arith.constant 0.000000e+00 : f32
    %138 = vector.broadcast %cst_64 : f32 to vector<8x120xf32>
    %139 = arith.maximumf %137, %138 : vector<8x120xf32>
    %c9 = arith.constant 9 : index
    %c0_65 = arith.constant 0 : index
    %c0_66 = arith.constant 0 : index
    %140 = vector.load %arg11[%c9, %c0_65, %c0_66] : memref<12x8x120xf32, #tpu.memory_space<vmem>>, vector<1x8x120xf32>
    %141 = vector.shape_cast %140 : vector<1x8x120xf32> to vector<8x120xf32>
    %142 = vector.shape_cast %139 : vector<8x120xf32> to vector<1x8x120xf32>
    tpu.vector_store %arg11[%c9, %c0_65, %c0_66], %142 {strides = array<i32>} : memref<12x8x120xf32, #tpu.memory_space<vmem>>, vector<1x8x120xf32>,
    %143 = vector.extract_strided_slice %42 {offsets = [20, 0, 0], sizes = [1, 8, 120], strides = [1, 1, 1]} : vector<24x8x120xf32> to vector<1x8x120xf32>
    %144 = vector.shape_cast %143 : vector<1x8x120xf32> to vector<8x120xf32>
    %145 = vector.extract_strided_slice %42 {offsets = [21, 0, 0], sizes = [1, 8, 120], strides = [1, 1, 1]} : vector<24x8x120xf32> to vector<1x8x120xf32>
    %146 = vector.shape_cast %145 : vector<1x8x120xf32> to vector<8x120xf32>
    %147 = arith.maximumf %144, %146 : vector<8x120xf32>
    %cst_67 = arith.constant 0.000000e+00 : f32
    %148 = vector.broadcast %cst_67 : f32 to vector<8x120xf32>
    %149 = arith.maximumf %147, %148 : vector<8x120xf32>
    %c10 = arith.constant 10 : index
    %c0_68 = arith.constant 0 : index
    %c0_69 = arith.constant 0 : index
    %150 = vector.load %arg11[%c10, %c0_68, %c0_69] : memref<12x8x120xf32, #tpu.memory_space<vmem>>, vector<1x8x120xf32>
    %151 = vector.shape_cast %150 : vector<1x8x120xf32> to vector<8x120xf32>
    %152 = vector.shape_cast %149 : vector<8x120xf32> to vector<1x8x120xf32>
    tpu.vector_store %arg11[%c10, %c0_68, %c0_69], %152 {strides = array<i32>} : memref<12x8x120xf32, #tpu.memory_space<vmem>>, vector<1x8x120xf32>,
    %153 = vector.extract_strided_slice %42 {offsets = [22, 0, 0], sizes = [1, 8, 120], strides = [1, 1, 1]} : vector<24x8x120xf32> to vector<1x8x120xf32>
    %154 = vector.shape_cast %153 : vector<1x8x120xf32> to vector<8x120xf32>
    %155 = vector.extract_strided_slice %42 {offsets = [23, 0, 0], sizes = [1, 8, 120], strides = [1, 1, 1]} : vector<24x8x120xf32> to vector<1x8x120xf32>
    %156 = vector.shape_cast %155 : vector<1x8x120xf32> to vector<8x120xf32>
    %157 = arith.maximumf %154, %156 : vector<8x120xf32>
    %cst_70 = arith.constant 0.000000e+00 : f32
    %158 = vector.broadcast %cst_70 : f32 to vector<8x120xf32>
    %159 = arith.maximumf %157, %158 : vector<8x120xf32>
    %c11 = arith.constant 11 : index
    %c0_71 = arith.constant 0 : index
    %c0_72 = arith.constant 0 : index
    %160 = vector.load %arg11[%c11, %c0_71, %c0_72] : memref<12x8x120xf32, #tpu.memory_space<vmem>>, vector<1x8x120xf32>
    %161 = vector.shape_cast %160 : vector<1x8x120xf32> to vector<8x120xf32>
    %162 = vector.shape_cast %159 : vector<8x120xf32> to vector<1x8x120xf32>
    tpu.vector_store %arg11[%c11, %c0_71, %c0_72], %162 {strides = array<i32>} : memref<12x8x120xf32, #tpu.memory_space<vmem>>, vector<1x8x120xf32>,
    %cst_73 = arith.constant 0.000000e+00 : f32
    %163 = vector.broadcast %cst_73 : f32 to vector<64x256xf32>
    %c0_74 = arith.constant 0 : index
    %c0_75 = arith.constant 0 : index
    %c0_76 = arith.constant 0 : index
    %164 = vector.load %arg11[%c0_74, %c0_75, %c0_76] : memref<12x8x120xf32, #tpu.memory_space<vmem>>, vector<8x8x120xf32>
    %165 = vector.shape_cast %164 : vector<8x8x120xf32> to vector<64x120xf32>
    %166 = arith.truncf %165 : vector<64x120xf32> to vector<64x120xbf16>
    %c0_77 = arith.constant 0 : index
    %c0_78 = arith.constant 0 : index
    %c0_79 = arith.constant 0 : index
    %167 = vector.load %arg4[%c0_77, %c0_78, %c0_79] : memref<5x120x256xbf16, #tpu.memory_space<vmem>>, vector<1x120x256xbf16>
    %168 = vector.shape_cast %167 : vector<1x120x256xbf16> to vector<120x256xbf16>
    %cst_80 = arith.constant dense<0.000000e+00> : vector<64x256xf32>
    %169 = tpu.matmul %166, %168, %cst_80 {dimension_numbers = #tpu.dot_dimension_numbers<[1], [0], [0], [1], [0, 0, 1, 1], [], []>} : vector<64x120xbf16>, vector<120x256xbf16>, vector<64x256xf32> -> vector<64x256xf32>
    %170 = arith.addf %163, %169 : vector<64x256xf32>
    %c1_81 = arith.constant 1 : index
    %c0_82 = arith.constant 0 : index
    %c0_83 = arith.constant 0 : index
    %171 = vector.load %arg11[%c1_81, %c0_82, %c0_83] : memref<12x8x120xf32, #tpu.memory_space<vmem>>, vector<8x8x120xf32>
    %172 = vector.shape_cast %171 : vector<8x8x120xf32> to vector<64x120xf32>
    %173 = arith.truncf %172 : vector<64x120xf32> to vector<64x120xbf16>
    %c1_84 = arith.constant 1 : index
    %c0_85 = arith.constant 0 : index
    %c0_86 = arith.constant 0 : index
    %174 = vector.load %arg4[%c1_84, %c0_85, %c0_86] : memref<5x120x256xbf16, #tpu.memory_space<vmem>>, vector<1x120x256xbf16>
    %175 = vector.shape_cast %174 : vector<1x120x256xbf16> to vector<120x256xbf16>
    %cst_87 = arith.constant dense<0.000000e+00> : vector<64x256xf32>
    %176 = tpu.matmul %173, %175, %cst_87 {dimension_numbers = #tpu.dot_dimension_numbers<[1], [0], [0], [1], [0, 0, 1, 1], [], []>} : vector<64x120xbf16>, vector<120x256xbf16>, vector<64x256xf32> -> vector<64x256xf32>
    %177 = arith.addf %170, %176 : vector<64x256xf32>
    %c2_88 = arith.constant 2 : index
    %c0_89 = arith.constant 0 : index
    %c0_90 = arith.constant 0 : index
    %178 = vector.load %arg11[%c2_88, %c0_89, %c0_90] : memref<12x8x120xf32, #tpu.memory_space<vmem>>, vector<8x8x120xf32>
    %179 = vector.shape_cast %178 : vector<8x8x120xf32> to vector<64x120xf32>
    %180 = arith.truncf %179 : vector<64x120xf32> to vector<64x120xbf16>
    %c2_91 = arith.constant 2 : index
    %c0_92 = arith.constant 0 : index
    %c0_93 = arith.constant 0 : index
    %181 = vector.load %arg4[%c2_91, %c0_92, %c0_93] : memref<5x120x256xbf16, #tpu.memory_space<vmem>>, vector<1x120x256xbf16>
    %182 = vector.shape_cast %181 : vector<1x120x256xbf16> to vector<120x256xbf16>
    %cst_94 = arith.constant dense<0.000000e+00> : vector<64x256xf32>
    %183 = tpu.matmul %180, %182, %cst_94 {dimension_numbers = #tpu.dot_dimension_numbers<[1], [0], [0], [1], [0, 0, 1, 1], [], []>} : vector<64x120xbf16>, vector<120x256xbf16>, vector<64x256xf32> -> vector<64x256xf32>
    %184 = arith.addf %177, %183 : vector<64x256xf32>
    %c3_95 = arith.constant 3 : index
    %c0_96 = arith.constant 0 : index
    %c0_97 = arith.constant 0 : index
    %185 = vector.load %arg11[%c3_95, %c0_96, %c0_97] : memref<12x8x120xf32, #tpu.memory_space<vmem>>, vector<8x8x120xf32>
    %186 = vector.shape_cast %185 : vector<8x8x120xf32> to vector<64x120xf32>
    %187 = arith.truncf %186 : vector<64x120xf32> to vector<64x120xbf16>
    %c3_98 = arith.constant 3 : index
    %c0_99 = arith.constant 0 : index
    %c0_100 = arith.constant 0 : index
    %188 = vector.load %arg4[%c3_98, %c0_99, %c0_100] : memref<5x120x256xbf16, #tpu.memory_space<vmem>>, vector<1x120x256xbf16>
    %189 = vector.shape_cast %188 : vector<1x120x256xbf16> to vector<120x256xbf16>
    %cst_101 = arith.constant dense<0.000000e+00> : vector<64x256xf32>
    %190 = tpu.matmul %187, %189, %cst_101 {dimension_numbers = #tpu.dot_dimension_numbers<[1], [0], [0], [1], [0, 0, 1, 1], [], []>} : vector<64x120xbf16>, vector<120x256xbf16>, vector<64x256xf32> -> vector<64x256xf32>
    %191 = arith.addf %184, %190 : vector<64x256xf32>
    %c4_102 = arith.constant 4 : index
    %c0_103 = arith.constant 0 : index
    %c0_104 = arith.constant 0 : index
    %192 = vector.load %arg11[%c4_102, %c0_103, %c0_104] : memref<12x8x120xf32, #tpu.memory_space<vmem>>, vector<8x8x120xf32>
    %193 = vector.shape_cast %192 : vector<8x8x120xf32> to vector<64x120xf32>
    %194 = arith.truncf %193 : vector<64x120xf32> to vector<64x120xbf16>
    %c4_105 = arith.constant 4 : index
    %c0_106 = arith.constant 0 : index
    %c0_107 = arith.constant 0 : index
    %195 = vector.load %arg4[%c4_105, %c0_106, %c0_107] : memref<5x120x256xbf16, #tpu.memory_space<vmem>>, vector<1x120x256xbf16>
    %196 = vector.shape_cast %195 : vector<1x120x256xbf16> to vector<120x256xbf16>
    %cst_108 = arith.constant dense<0.000000e+00> : vector<64x256xf32>
    %197 = tpu.matmul %194, %196, %cst_108 {dimension_numbers = #tpu.dot_dimension_numbers<[1], [0], [0], [1], [0, 0, 1, 1], [], []>} : vector<64x120xbf16>, vector<120x256xbf16>, vector<64x256xf32> -> vector<64x256xf32>
    %198 = arith.addf %191, %197 : vector<64x256xf32>
    %c0_109 = arith.constant 0 : index
    %c0_110 = arith.constant 0 : index
    %199 = vector.load %arg5[%c0_109, %c0_110] : memref<1x256xf32, #tpu.memory_space<vmem>>, vector<1x256xf32>
    %200 = vector.broadcast %199 : vector<1x256xf32> to vector<64x256xf32>
    %201 = arith.addf %198, %200 : vector<64x256xf32>
    %202 = vector.extract_strided_slice %201 {offsets = [0, 0], sizes = [64, 80], strides = [1, 1]} : vector<64x256xf32> to vector<64x80xf32>
    %203 = vector.extract_strided_slice %201 {offsets = [0, 128], sizes = [64, 80], strides = [1, 1]} : vector<64x256xf32> to vector<64x80xf32>
    %204 = arith.maximumf %202, %203 : vector<64x80xf32>
    %205 = vector.shape_cast %204 : vector<64x80xf32> to vector<8x8x80xf32>
    %cst_111 = arith.constant 0.000000e+00 : f32
    %206 = vector.broadcast %cst_111 : f32 to vector<8x50xf32>
    %207 = vector.extract_strided_slice %205 {offsets = [0, 0, 0], sizes = [1, 8, 80], strides = [1, 1, 1]} : vector<8x8x80xf32> to vector<1x8x80xf32>
    %208 = vector.shape_cast %207 : vector<1x8x80xf32> to vector<8x80xf32>
    %209 = vector.extract_strided_slice %205 {offsets = [1, 0, 0], sizes = [1, 8, 80], strides = [1, 1, 1]} : vector<8x8x80xf32> to vector<1x8x80xf32>
    %210 = vector.shape_cast %209 : vector<1x8x80xf32> to vector<8x80xf32>
    %211 = arith.maximumf %208, %210 : vector<8x80xf32>
    %cst_112 = arith.constant 0.000000e+00 : f32
    %212 = vector.broadcast %cst_112 : f32 to vector<8x80xf32>
    %213 = arith.maximumf %211, %212 : vector<8x80xf32>
    %214 = arith.truncf %213 : vector<8x80xf32> to vector<8x80xbf16>
    %c0_113 = arith.constant 0 : index
    %c0_114 = arith.constant 0 : index
    %c0_115 = arith.constant 0 : index
    %215 = vector.load %arg6[%c0_113, %c0_114, %c0_115] : memref<4x80x50xbf16, #tpu.memory_space<vmem>>, vector<1x80x50xbf16>
    %216 = vector.shape_cast %215 : vector<1x80x50xbf16> to vector<80x50xbf16>
    %cst_116 = arith.constant dense<0.000000e+00> : vector<8x50xf32>
    %217 = tpu.matmul %214, %216, %cst_116 {dimension_numbers = #tpu.dot_dimension_numbers<[1], [0], [0], [1], [0, 0, 1, 1], [], []>} : vector<8x80xbf16>, vector<80x50xbf16>, vector<8x50xf32> -> vector<8x50xf32>
    %218 = arith.addf %206, %217 : vector<8x50xf32>
    %219 = vector.extract_strided_slice %205 {offsets = [2, 0, 0], sizes = [1, 8, 80], strides = [1, 1, 1]} : vector<8x8x80xf32> to vector<1x8x80xf32>
    %220 = vector.shape_cast %219 : vector<1x8x80xf32> to vector<8x80xf32>
    %221 = vector.extract_strided_slice %205 {offsets = [3, 0, 0], sizes = [1, 8, 80], strides = [1, 1, 1]} : vector<8x8x80xf32> to vector<1x8x80xf32>
    %222 = vector.shape_cast %221 : vector<1x8x80xf32> to vector<8x80xf32>
    %223 = arith.maximumf %220, %222 : vector<8x80xf32>
    %cst_117 = arith.constant 0.000000e+00 : f32
    %224 = vector.broadcast %cst_117 : f32 to vector<8x80xf32>
    %225 = arith.maximumf %223, %224 : vector<8x80xf32>
    %226 = arith.truncf %225 : vector<8x80xf32> to vector<8x80xbf16>
    %c1_118 = arith.constant 1 : index
    %c0_119 = arith.constant 0 : index
    %c0_120 = arith.constant 0 : index
    %227 = vector.load %arg6[%c1_118, %c0_119, %c0_120] : memref<4x80x50xbf16, #tpu.memory_space<vmem>>, vector<1x80x50xbf16>
    %228 = vector.shape_cast %227 : vector<1x80x50xbf16> to vector<80x50xbf16>
    %cst_121 = arith.constant dense<0.000000e+00> : vector<8x50xf32>
    %229 = tpu.matmul %226, %228, %cst_121 {dimension_numbers = #tpu.dot_dimension_numbers<[1], [0], [0], [1], [0, 0, 1, 1], [], []>} : vector<8x80xbf16>, vector<80x50xbf16>, vector<8x50xf32> -> vector<8x50xf32>
    %230 = arith.addf %218, %229 : vector<8x50xf32>
    %231 = vector.extract_strided_slice %205 {offsets = [4, 0, 0], sizes = [1, 8, 80], strides = [1, 1, 1]} : vector<8x8x80xf32> to vector<1x8x80xf32>
    %232 = vector.shape_cast %231 : vector<1x8x80xf32> to vector<8x80xf32>
    %233 = vector.extract_strided_slice %205 {offsets = [5, 0, 0], sizes = [1, 8, 80], strides = [1, 1, 1]} : vector<8x8x80xf32> to vector<1x8x80xf32>
    %234 = vector.shape_cast %233 : vector<1x8x80xf32> to vector<8x80xf32>
    %235 = arith.maximumf %232, %234 : vector<8x80xf32>
    %cst_122 = arith.constant 0.000000e+00 : f32
    %236 = vector.broadcast %cst_122 : f32 to vector<8x80xf32>
    %237 = arith.maximumf %235, %236 : vector<8x80xf32>
    %238 = arith.truncf %237 : vector<8x80xf32> to vector<8x80xbf16>
    %c2_123 = arith.constant 2 : index
    %c0_124 = arith.constant 0 : index
    %c0_125 = arith.constant 0 : index
    %239 = vector.load %arg6[%c2_123, %c0_124, %c0_125] : memref<4x80x50xbf16, #tpu.memory_space<vmem>>, vector<1x80x50xbf16>
    %240 = vector.shape_cast %239 : vector<1x80x50xbf16> to vector<80x50xbf16>
    %cst_126 = arith.constant dense<0.000000e+00> : vector<8x50xf32>
    %241 = tpu.matmul %238, %240, %cst_126 {dimension_numbers = #tpu.dot_dimension_numbers<[1], [0], [0], [1], [0, 0, 1, 1], [], []>} : vector<8x80xbf16>, vector<80x50xbf16>, vector<8x50xf32> -> vector<8x50xf32>
    %242 = arith.addf %230, %241 : vector<8x50xf32>
    %243 = vector.extract_strided_slice %205 {offsets = [6, 0, 0], sizes = [1, 8, 80], strides = [1, 1, 1]} : vector<8x8x80xf32> to vector<1x8x80xf32>
    %244 = vector.shape_cast %243 : vector<1x8x80xf32> to vector<8x80xf32>
    %245 = vector.extract_strided_slice %205 {offsets = [7, 0, 0], sizes = [1, 8, 80], strides = [1, 1, 1]} : vector<8x8x80xf32> to vector<1x8x80xf32>
    %246 = vector.shape_cast %245 : vector<1x8x80xf32> to vector<8x80xf32>
    %247 = arith.maximumf %244, %246 : vector<8x80xf32>
    %cst_127 = arith.constant 0.000000e+00 : f32
    %248 = vector.broadcast %cst_127 : f32 to vector<8x80xf32>
    %249 = arith.maximumf %247, %248 : vector<8x80xf32>
    %250 = arith.truncf %249 : vector<8x80xf32> to vector<8x80xbf16>
    %c3_128 = arith.constant 3 : index
    %c0_129 = arith.constant 0 : index
    %c0_130 = arith.constant 0 : index
    %251 = vector.load %arg6[%c3_128, %c0_129, %c0_130] : memref<4x80x50xbf16, #tpu.memory_space<vmem>>, vector<1x80x50xbf16>
    %252 = vector.shape_cast %251 : vector<1x80x50xbf16> to vector<80x50xbf16>
    %cst_131 = arith.constant dense<0.000000e+00> : vector<8x50xf32>
    %253 = tpu.matmul %250, %252, %cst_131 {dimension_numbers = #tpu.dot_dimension_numbers<[1], [0], [0], [1], [0, 0, 1, 1], [], []>} : vector<8x80xbf16>, vector<80x50xbf16>, vector<8x50xf32> -> vector<8x50xf32>
    %254 = arith.addf %242, %253 : vector<8x50xf32>
    %c0_132 = arith.constant 0 : index
    %c0_133 = arith.constant 0 : index
    %255 = vector.load %arg7[%c0_132, %c0_133] : memref<1x50xf32, #tpu.memory_space<vmem>>, vector<1x50xf32>
    %256 = vector.broadcast %255 : vector<1x50xf32> to vector<8x50xf32>
    %257 = arith.addf %254, %256 : vector<8x50xf32>
    %cst_134 = arith.constant 0.000000e+00 : f32
    %258 = vector.broadcast %cst_134 : f32 to vector<8x50xf32>
    %259 = arith.maximumf %257, %258 : vector<8x50xf32>
    %260 = arith.truncf %259 : vector<8x50xf32> to vector<8x50xbf16>
    %c0_135 = arith.constant 0 : index
    %c0_136 = arith.constant 0 : index
    %261 = vector.load %arg8[%c0_135, %c0_136] : memref<50x10xbf16, #tpu.memory_space<vmem>>, vector<50x10xbf16>
    %cst_137 = arith.constant dense<0.000000e+00> : vector<8x10xf32>
    %262 = tpu.matmul %260, %261, %cst_137 {dimension_numbers = #tpu.dot_dimension_numbers<[1], [0], [0], [1], [0, 0, 1, 1], [], []>} : vector<8x50xbf16>, vector<50x10xbf16>, vector<8x10xf32> -> vector<8x10xf32>
    %c0_138 = arith.constant 0 : index
    %c0_139 = arith.constant 0 : index
    %263 = vector.load %arg9[%c0_138, %c0_139] : memref<1x10xf32, #tpu.memory_space<vmem>>, vector<1x10xf32>
    %264 = vector.broadcast %263 : vector<1x10xf32> to vector<8x10xf32>
    %265 = arith.addf %262, %264 : vector<8x10xf32>
    %cst_140 = arith.constant dense<0xFF800000> : vector<8xf32>
    %266 = vector.multi_reduction <maximumf>, %265, %cst_140 [1] : vector<8x10xf32> to vector<8xf32>
    %267 = vector.shape_cast %266 : vector<8xf32> to vector<8x1xf32>
    %268 = vector.broadcast %267 : vector<8x1xf32> to vector<8x10xf32>
    %269 = arith.subf %265, %268 : vector<8x10xf32>
    %270 = math.exp %269 : vector<8x10xf32>
    %cst_141 = arith.constant dense<0.000000e+00> : vector<8xf32>
    %271 = vector.multi_reduction <add>, %270, %cst_141 [1] : vector<8x10xf32> to vector<8xf32>
    %272 = vector.shape_cast %271 : vector<8xf32> to vector<8x1xf32>
    %273 = math.log %272 : vector<8x1xf32>
    %274 = vector.broadcast %273 : vector<8x1xf32> to vector<8x10xf32>
    %275 = arith.subf %269, %274 : vector<8x10xf32>
    %c0_142 = arith.constant 0 : index
    %c0_143 = arith.constant 0 : index
    %276 = vector.load %arg10[%c0_142, %c0_143] : memref<8x10xf32, #tpu.memory_space<vmem>>, vector<8x10xf32>
    tpu.vector_store %arg10[%c0_142, %c0_143], %275 {strides = array<i32>} : memref<8x10xf32, #tpu.memory_space<vmem>>, vector<8x10xf32>,
    return
  }
  func.func @transform_0(%arg0: i32) -> (i32, i32, i32) {
    %c0_i32 = arith.constant 0 : i32
    %c0_i32_0 = arith.constant 0 : i32
    %c0_i32_1 = arith.constant 0 : i32
    return %c0_i32, %arg0, %c0_i32_0 : i32, i32, i32
  }
  func.func @transform_1(%arg0: i32) -> (i32, i32, i32) {
    %c0_i32 = arith.constant 0 : i32
    %c0_i32_0 = arith.constant 0 : i32
    %c0_i32_1 = arith.constant 0 : i32
    %c0_i32_2 = arith.constant 0 : i32
    return %c0_i32, %c0_i32_0, %c0_i32_1 : i32, i32, i32
  }
  func.func @transform_2(%arg0: i32) -> (i32, i32) {
    %c0_i32 = arith.constant 0 : i32
    %c0_i32_0 = arith.constant 0 : i32
    %c0_i32_1 = arith.constant 0 : i32
    return %c0_i32, %c0_i32_0 : i32, i32
  }
  func.func @transform_3(%arg0: i32) -> (i32, i32, i32) {
    %c0_i32 = arith.constant 0 : i32
    %c0_i32_0 = arith.constant 0 : i32
    %c0_i32_1 = arith.constant 0 : i32
    %c0_i32_2 = arith.constant 0 : i32
    return %c0_i32, %c0_i32_0, %c0_i32_1 : i32, i32, i32
  }
  func.func @transform_4(%arg0: i32) -> (i32, i32) {
    %c0_i32 = arith.constant 0 : i32
    %c0_i32_0 = arith.constant 0 : i32
    %c0_i32_1 = arith.constant 0 : i32
    return %c0_i32, %c0_i32_0 : i32, i32
  }
  func.func @transform_5(%arg0: i32) -> (i32, i32, i32) {
    %c0_i32 = arith.constant 0 : i32
    %c0_i32_0 = arith.constant 0 : i32
    %c0_i32_1 = arith.constant 0 : i32
    %c0_i32_2 = arith.constant 0 : i32
    return %c0_i32, %c0_i32_0, %c0_i32_1 : i32, i32, i32
  }
  func.func @transform_6(%arg0: i32) -> (i32, i32) {
    %c0_i32 = arith.constant 0 : i32
    %c0_i32_0 = arith.constant 0 : i32
    %c0_i32_1 = arith.constant 0 : i32
    return %c0_i32, %c0_i32_0 : i32, i32
  }
  func.func @transform_7(%arg0: i32) -> (i32, i32) {
    %c0_i32 = arith.constant 0 : i32
    %c0_i32_0 = arith.constant 0 : i32
    %c0_i32_1 = arith.constant 0 : i32
    return %c0_i32, %c0_i32_0 : i32, i32
  }
  func.func @transform_8(%arg0: i32) -> (i32, i32) {
    %c0_i32 = arith.constant 0 : i32
    %c0_i32_0 = arith.constant 0 : i32
    %c0_i32_1 = arith.constant 0 : i32
    return %c0_i32, %c0_i32_0 : i32, i32
  }
  func.func @transform_9(%arg0: i32) -> (i32, i32) {
    %c0_i32 = arith.constant 0 : i32
    %c0_i32_0 = arith.constant 0 : i32
    return %arg0, %c0_i32 : i32, i32
  }
}

</mosaic_0001>

<bundles_post_ra>
// kernel: simple_cnn_forward.1
= control target key start
LH: loop header
LB: loop body
LE: loop exit
PB: predicated region body
PF: predicated region fallthrough
CT: control target
= control target key end

     0   :  { %14 = vsyncpa [#allocation4], 0  ;;  %s3823_s30 = smov [#allocation3]   ;;  %s5291_s0 = inlined_call_operand.vmem [shape: f32[28,8,28], index: 0, kind: input, shape index: {}]   ;;  %s5292_s1 = inlined_call_operand.hbm [shape: bf16[5,28,256], index: 1, kind: input, shape index: {}]   ;;  %s5293_s2 = inlined_call_operand.vmem [shape: f32[1,256], index: 2, kind: input, shape index: {}]   ;;  %s5294_s3 = inlined_call_operand.vmem [shape: bf16[5,120,256], index: 3, kind: input, shape index: {}]   ;;  %s5295_s4 = inlined_call_operand.vmem [shape: f32[1,256], index: 4, kind: input, shape index: {}]   ;;  %s5296_s5 = inlined_call_operand.vmem [shape: bf16[4,80,50], index: 5, kind: input, shape index: {}]   ;;  %s5297_s6 = inlined_call_operand.vmem [shape: f32[1,50], index: 6, kind: input, shape index: {}]   ;;  %s5298_s7 = inlined_call_operand.vmem [shape: bf16[50,10], index: 7, kind: input, shape index: {}]   ;;  %s5299_s8 = inlined_call_operand.vmem [shape: f32[1,10], index: 8, kind: input, shape index: {}]   ;;  %s5300_s9 = inlined_call_operand.vmem [shape: f32[8,10], index: 9, kind: output, shape index: {}]  }
   0x1   :  { %s22_s10 = sshll.u32 %s3823_s30, 4  ;;  %s23_s10 = int_to_ptr.vmem [resolvable:$true] %s22_s10 }
   0x2   :  { %s3809_s11 = scalar_lea.vmem %s23_s10, 2560  ;;  %p3814_p1 = scmp.lt.s32.totalorder %s23_s10, %s23_s10 }
   0x3   :  { %p3810_p0 = scmp.ne.s32.totalorder %s23_s10, %s3809_s11  ;;  %p3815_p2 = scmp.lt.s32.totalorder %s3809_s11, %s3809_s11 }
   0x5   :  { %p3816_p3 = por %p3815_p2, %p3814_p1 }
   0x7   :  { %p3817_p4 = pnand %p3816_p3, %p3810_p0 }
   0x9   :  { %3820 = shalt.err (!%p3817_p4)
}
   0xa   :  { %s3824_s12 = smov 128   ;;  %s3825_s13 = smov 8  }
   0xb   :  { %28 = dma.hbm_to_vmem [thread:$0]  %s5292_s1, 2560, %s23_s10, [#allocation4], %s3824_s12, %s3824_s12, %s3825_s13  }
   0xc   :  { %3821 = dma.done.wait [#allocation4], 2560  }
   0xd   :  { %3822 = vsyncadd [#allocation4], 4294964736  ;;  %v5301_v0 = vmov 0   ;;  %vm184_vm0 = vcmask 1045504   ;;  %v3631_v3 = vld [vmem:[#allocation3 + $0x24] ss:$8 sps:$4 sm:$0xff]  }
   0xe   :  { %223 = vmatprep.mubr.bf16.mxu0 %v5301_v0  ;;  %333 = vmatprep.mubr.bf16.mxu1 %v5301_v0  ;;  %v3628_v1 = vld [vmem:[#allocation3 + $0x34] ss:$8 sps:$4 sm:$0x3f]   ;;  %v3630_v2 = vld [vmem:[#allocation3 + $0x30] ss:$8 sps:$4 sm:$0x3f]  }
   0xf   :  { %3142 = vmatprep.subr.msk.bf16.mxu0 %vm184_vm0, %v3628_v1  ;;  %3618 = vmatprep.subr.msk.bf16.mxu1 %vm184_vm0, %v3628_v1  ;;  %v3633_v4 = vld [vmem:[#allocation3 + $0x20] ss:$8 sps:$4 sm:$0xff]   ;;  %v186_v6 = vsel %vm184_vm0, %v3630_v2, 0  ;;  %v3115_v7 = vld [vmem:[%s5291_s0 + $0x10] sm:$0xff]  ;;  %v3896_v8 = vld [vmem:[%s5291_s0 + $0xb8] sm:$0xff]  ;;  %vm147_vm1 = vcmask 228352  }
  0x10   :  { %v3114_v5 = vld [vmem:[%s5291_s0 + $0x8] sm:$0xff]  ;;  %v3901_v9 = vld [vmem:[%s5291_s0 + $0xc0] sm:$0xff]  ;;  %204 = vmatpush1.bf16.msra.mxu0 %v186_v6  ;;  %3620 = vmatpush1.bf16.msra.mxu1 %v186_v6  ;;  %v3634_v10 = vld [vmem:[#allocation3 + $0x14] ss:$8 sps:$4 sm:$0x3f]   ;;  %vm1740_vm2 = vcmask 1043456  }
  0x11   :  { %205 = vmatprep.subr.bf16.mxu0 %v3631_v3  ;;  %3619 = vmatprep.subr.bf16.mxu1 %v3631_v3  ;;  %v3636_v11 = vld [vmem:[#allocation3 + $0x54] ss:$8 sps:$4 sm:$0x3f]   ;;  %v3638_v12 = vld [vmem:[#allocation3 + $0x10] ss:$8 sps:$4 sm:$0x3f]   ;;  %v112_v14 = vpack.c.bf16 %v3115_v7, %v3114_v5  ;;  %v3905_v15 = vpack.c.bf16 %v3901_v9, %v3896_v8 }
  0x12   :  { %v3639_v13 = vld [vmem:[#allocation3 + $0x50] ss:$8 sps:$4 sm:$0x3f]   ;;  %v399_v16 = vsel %vm184_vm0, %v3638_v12, 0  ;;  %v3642_v18 = vld [vmem:[#allocation3 + $0x4] ss:$8 sps:$4 sm:$0xff]  }
  0x13   :  { %v654_v17 = vsel %vm184_vm0, %v3639_v13, 0  ;;  %v3640_v19 = vld [vmem:[#allocation3] ss:$8 sps:$4 sm:$0xff]   ;;  %v3116_v20 = vld [vmem:[%s5291_s0 + $0x18] sm:$0xff]  ;;  %v3645_v24 = vld [vmem:[#allocation3 + $0x44] ss:$8 sps:$4 sm:$0xff]  }
  0x14   :  { %206 = vmatpush1.bf16.msra.mxu0 %v3633_v4  ;;  %3621 = vmatpush1.bf16.msra.mxu1 %v3633_v4  ;;  %v3117_v21 = vld [vmem:[%s5291_s0 + $0x20] sm:$0xff]  ;;  %v3646_v27 = vld [vmem:[#allocation3 + $0x74] ss:$8 sps:$4 sm:$0x3f]   ;;  %v3118_v29 = vld [vmem:[%s5291_s0 + $0x28] sm:$0xff]  ;;  %v3943_v36 = vpack.c.bf16 %v3116_v20, %v3115_v7  ;;  %vm1552_vm3 = vcmask 982016  }
  0x15   :  { %3159 = vmatprep.subr.msk.bf16.mxu1 %vm184_vm0, %v3634_v10  ;;  %3200 = vmatprep.subr.msk.bf16.mxu0 %vm184_vm0, %v3636_v11  ;;  %v47_v22 = vld [vmem:[%s5291_s0] sm:$0xff]  ;;  %v3925_v25 = vpack.c.bf16 %v3117_v21, %v3116_v20  ;;  %v3648_v28 = vld [vmem:[#allocation3 + $0x70] ss:$8 sps:$4 sm:$0x3f]   ;;  %v3959_v40 = vpack.c.bf16 %v3118_v29, %v3117_v21  ;;  %v3122_v41 = vld [vmem:[%s5291_s0 + $0x48] sm:$0xff]  ;;  %vm3828_vm4 = vmmov 0  }
  0x16   :  { %v3643_v23 = vld [vmem:[#allocation3 + $0x40] ss:$8 sps:$4 sm:$0xff]   ;;  %v71_v26 = vpack.c.bf16 %v3114_v5, %v47_v22  ;;  %v3649_v30 = vld [vmem:[#allocation3 + $0x94] ss:$8 sps:$4 sm:$0x3f]   ;;  %v957_v32 = vsel %vm184_vm0, %v3648_v28, 0 }
  0x17   :  { %3143 = vmatmul.mubr.msk.bf16.vlgmr.msra.gmra.mxu0 %vm147_vm1, %v112_v14  ;;  %3154 = vmatmul.mubr.msk.bf16.vlgmr.msra.gmra.mxu1 %vm147_vm1, %v3905_v15  ;;  %v3119_v31 = vld [vmem:[%s5291_s0 + $0x30] sm:$0xff]  ;;  %v3654_v33 = vld [vmem:[#allocation3 + $0x64] ss:$8 sps:$4 sm:$0xff]   ;;  %v3652_v34 = vld [vmem:[#allocation3 + $0x60] ss:$8 sps:$4 sm:$0xff]   ;;  %vm2709_vm5 = vcmask 654336  }
  0x18   :  { %417 = vmatpush1.bf16.msra.mxu1 %v399_v16  ;;  %672 = vmatpush1.bf16.msra.mxu0 %v654_v17  ;;  %v3941_v35 = vpack.c.bf16 %v3119_v31, %v3118_v29  ;;  %v3120_v37 = vld [vmem:[%s5291_s0 + $0x38] sm:$0xff]  ;;  %v3121_v38 = vld [vmem:[%s5291_s0 + $0x40] sm:$0xff]  ;;  %v3123_v42 = vld [vmem:[%s5291_s0 + $0x50] sm:$0xff]  ;;  %vm3051_vm6 = vcmask 1040384   ;;  %vm3047_vm7 = vcmask 408576   ;;  %vm3095_vm8 = vcmask 80896  }
  0x19   :  { %418 = vmatprep.subr.bf16.mxu1 %v3642_v18  ;;  %233 = vmatprep.mubr.bf16.mxu0 %v5301_v0  ;;  %v3957_v39 = vpack.c.bf16 %v3121_v38, %v3120_v37  ;;  %v3973_v43 = vpack.c.bf16 %v3123_v42, %v3122_v41  ;;  %v3975_v44 = vpack.c.bf16 %v3120_v37, %v3119_v31  ;;  %v3124_v45 = vld [vmem:[%s5291_s0 + $0x58] sm:$0xff]  ;;  %v3125_v46 = vld [vmem:[%s5291_s0 + $0x60] sm:$0xff]  ;;  %v3126_v49 = vld [vmem:[%s5291_s0 + $0x68] sm:$0xff] }
  0x1a   :  { %436 = vmatprep.mubr.bf16.mxu1 %v5301_v0  ;;  %673 = vmatprep.subr.bf16.mxu0 %v3645_v24  ;;  %v3989_v47 = vpack.c.bf16 %v3125_v46, %v3124_v45  ;;  %v3991_v48 = vpack.c.bf16 %v3122_v41, %v3121_v38  ;;  %v3127_v50 = vld [vmem:[%s5291_s0 + $0x70] sm:$0xff]  ;;  %v4007_v52 = vpack.c.bf16 %v3124_v45, %v3123_v42  ;;  %v3128_v53 = vld [vmem:[%s5291_s0 + $0x78] sm:$0xff]  ;;  %v3129_v54 = vld [vmem:[%s5291_s0 + $0x80] sm:$0xff] }
  0x1b   :  { %v4005_v51 = vpack.c.bf16 %v3127_v50, %v3126_v49  ;;  %v4021_v55 = vpack.c.bf16 %v3129_v54, %v3128_v53  ;;  %v4023_v56 = vpack.c.bf16 %v3126_v49, %v3125_v46  ;;  %v3130_v57 = vld [vmem:[%s5291_s0 + $0x88] sm:$0xff]  ;;  %v3131_v58 = vld [vmem:[%s5291_s0 + $0x90] sm:$0xff]  ;;  %v4039_v60 = vpack.c.bf16 %v3128_v53, %v3127_v50  ;;  %v3132_v61 = vld [vmem:[%s5291_s0 + $0x98] sm:$0xff] }
  0x1c   :  { %419 = vmatpush1.bf16.msra.mxu1 %v3640_v19  ;;  %674 = vmatpush1.bf16.msra.mxu0 %v3643_v23  ;;  %v4037_v59 = vpack.c.bf16 %v3131_v58, %v3130_v57  ;;  %v3133_v62 = vld [vmem:[%s5291_s0 + $0xa0] sm:$0xff]  ;;  %v4055_v1 = vpack.c.bf16 %v3130_v57, %v3129_v54  ;;  %v3134_v2 = vld [vmem:[%s5291_s0 + $0xa8] sm:$0xff]  ;;  %v3135_v3 = vld [vmem:[%s5291_s0 + $0xb0] sm:$0xff]  ;;  %v4069_v5 = vpack.c.bf16 %v3132_v61, %v3131_v58 }
  0x1d   :  { %3241 = vmatprep.subr.msk.bf16.mxu1 %vm184_vm0, %v3646_v27  ;;  %3282 = vmatprep.subr.msk.bf16.mxu0 %vm184_vm0, %v3649_v30  ;;  %v4053_v63 = vpack.c.bf16 %v3133_v62, %v3132_v61  ;;  %v122_v4 = vpack.c.bf16 %v3135_v3, %v3134_v2  ;;  %v3651_v6 = vld [vmem:[#allocation3 + $0x90] ss:$8 sps:$4 sm:$0x3f]   ;;  %v4076_v7 = vpack.c.bf16 %v3134_v2, %v3133_v62  ;;  %v3657_v11 = vld [vmem:[#allocation3 + $0x84] ss:$8 sps:$4 sm:$0xff]  }
  0x1e   :  { %v1260_v10 = vsel %vm184_vm0, %v3651_v6, 0  ;;  %v3655_v12 = vld [vmem:[#allocation3 + $0x80] ss:$8 sps:$4 sm:$0xff]   ;;  %v4086_v13 = vpack.c.bf16 %v3896_v8, %v3135_v3 }
  0x1f   :  { %3144 = vmatmul.mubr.msk.bf16.gmra.mxu0 %vm147_vm1, %v3925_v25  ;;  %3160 = vmatmul.mubr.msk.bf16.vlgmr.msra.gmra.mxu1 %vm147_vm1, %v71_v26  ;;  %v3195_v8 = vld [vmem:[%s5291_s0 + $0xc8] sm:$0xff] }
  0x20   :  { %243 = vmatprep.mubr.bf16.mxu0 %v5301_v0  ;;  %446 = vmatprep.mubr.bf16.mxu1 %v5301_v0  ;;  %v4152_v14 = vpack.c.bf16 %v3195_v8, %v3901_v9  ;;  %v4168_v9 = vld [vmem:[%s5291_s0 + $0xd0] sm:$0xff] }
  0x21   :  { %975 = vmatpush1.bf16.msra.mxu1 %v957_v32  ;;  %v896_v16 = vpack.c.bf16 %v4168_v9, %v3195_v8 }
  0x22   :  { %976 = vmatprep.subr.bf16.mxu1 %v3654_v33 }
  0x25   :  { %977 = vmatpush1.bf16.msra.mxu1 %v3652_v34 }
  0x27   :  { %3145 = vmatmul.mubr.msk.bf16.gmra.mxu0 %vm147_vm1, %v3941_v35  ;;  %3161 = vmatmul.mubr.msk.bf16.gmra.mxu1 %vm147_vm1, %v3943_v36 }
  0x28   :  { %253 = vmatprep.mubr.bf16.mxu0 %v5301_v0  ;;  %456 = vmatprep.mubr.bf16.mxu1 %v5301_v0 }
  0x2f   :  { %3146 = vmatmul.mubr.msk.bf16.gmra.mxu0 %vm147_vm1, %v3957_v39  ;;  %3162 = vmatmul.mubr.msk.bf16.gmra.mxu1 %vm147_vm1, %v3959_v40 }
  0x30   :  { %263 = vmatprep.mubr.bf16.mxu0 %v5301_v0  ;;  %466 = vmatprep.mubr.bf16.mxu1 %v5301_v0 }
  0x37   :  { %3147 = vmatmul.mubr.msk.bf16.gmra.mxu0 %vm147_vm1, %v3973_v43  ;;  %3163 = vmatmul.mubr.msk.bf16.gmra.mxu1 %vm147_vm1, %v3975_v44 }
  0x38   :  { %273 = vmatprep.mubr.bf16.mxu0 %v5301_v0  ;;  %476 = vmatprep.mubr.bf16.mxu1 %v5301_v0 }
  0x3f   :  { %3148 = vmatmul.mubr.msk.bf16.gmra.mxu0 %vm147_vm1, %v3989_v47  ;;  %3164 = vmatmul.mubr.msk.bf16.gmra.mxu1 %vm147_vm1, %v3991_v48 }
  0x40   :  { %283 = vmatprep.mubr.bf16.mxu0 %v5301_v0  ;;  %486 = vmatprep.mubr.bf16.mxu1 %v5301_v0 }
  0x47   :  { %3149 = vmatmul.mubr.msk.bf16.gmra.mxu0 %vm147_vm1, %v4005_v51  ;;  %3165 = vmatmul.mubr.msk.bf16.gmra.mxu1 %vm147_vm1, %v4007_v52 }
  0x48   :  { %293 = vmatprep.mubr.bf16.mxu0 %v5301_v0  ;;  %496 = vmatprep.mubr.bf16.mxu1 %v5301_v0 }
  0x4f   :  { %3150 = vmatmul.mubr.msk.bf16.gmra.mxu0 %vm147_vm1, %v4021_v55  ;;  %3166 = vmatmul.mubr.msk.bf16.gmra.mxu1 %vm147_vm1, %v4023_v56 }
  0x50   :  { %303 = vmatprep.mubr.bf16.mxu0 %v5301_v0  ;;  %506 = vmatprep.mubr.bf16.mxu1 %v5301_v0 }
  0x57   :  { %3151 = vmatmul.mubr.msk.bf16.gmra.mxu0 %vm147_vm1, %v4037_v59  ;;  %3167 = vmatmul.mubr.msk.bf16.gmra.mxu1 %vm147_vm1, %v4039_v60 }
  0x58   :  { %313 = vmatprep.mubr.bf16.mxu0 %v5301_v0  ;;  %516 = vmatprep.mubr.bf16.mxu1 %v5301_v0 }
  0x5f   :  { %3152 = vmatmul.mubr.msk.bf16.gmra.mxu0 %vm147_vm1, %v4053_v63  ;;  %3168 = vmatmul.mubr.msk.bf16.gmra.mxu1 %vm147_vm1, %v4055_v1 }
  0x60   :  { %323 = vmatprep.mubr.bf16.mxu0 %v5301_v0  ;;  %526 = vmatprep.mubr.bf16.mxu1 %v5301_v0 }
  0x67   :  { %3153 = vmatmul.mubr.msk.bf16.gmra.mxu0 %vm147_vm1, %v122_v4  ;;  %3169 = vmatmul.mubr.msk.bf16.gmra.mxu1 %vm147_vm1, %v4069_v5 }
  0x68   :  { %536 = vmatprep.mubr.bf16.mxu1 %v5301_v0  ;;  %691 = vmatprep.mubr.bf16.mxu0 %v5301_v0 }
  0x6f   :  { %3170 = vmatmul.mubr.msk.bf16.gmra.mxu1 %vm147_vm1, %v4076_v7  ;;  %3201 = vmatmul.mubr.msk.bf16.vlgmr.msra.gmra.mxu0 %vm147_vm1, %v3943_v36 }
  0x70   :  { %1278 = vmatpush1.bf16.msra.mxu0 %v1260_v10  ;;  %546 = vmatprep.mubr.bf16.mxu1 %v5301_v0 }
  0x71   :  { %701 = vmatprep.mubr.bf16.mxu0 %v5301_v0  ;;  %1279 = vmatprep.subr.bf16.mxu0 %v3657_v11 }
  0x74   :  { %1280 = vmatpush1.bf16.msra.mxu0 %v3655_v12 }
  0x77   :  { %3171 = vmatmul.mubr.msk.bf16.gmra.mxu1 %vm147_vm1, %v4086_v13  ;;  %3202 = vmatmul.mubr.msk.bf16.gmra.mxu0 %vm147_vm1, %v3959_v40 }
  0x78   :  { %711 = vmatprep.mubr.bf16.mxu0 %v5301_v0  ;;  %994 = vmatprep.mubr.bf16.mxu1 %v5301_v0 }
  0x7f   :  { %3203 = vmatmul.mubr.msk.bf16.gmra.mxu0 %vm147_vm1, %v3975_v44  ;;  %3242 = vmatmul.mubr.msk.bf16.vlgmr.msra.gmra.mxu1 %vm147_vm1, %v3925_v25 }
  0x80   :  { %721 = vmatprep.mubr.bf16.mxu0 %v5301_v0  ;;  %1004 = vmatprep.mubr.bf16.mxu1 %v5301_v0 }
  0x87   :  { %3204 = vmatmul.mubr.msk.bf16.gmra.mxu0 %vm147_vm1, %v3991_v48  ;;  %3243 = vmatmul.mubr.msk.bf16.gmra.mxu1 %vm147_vm1, %v3941_v35 }
  0x88   :  { %731 = vmatprep.mubr.bf16.mxu0 %v5301_v0  ;;  %1014 = vmatprep.mubr.bf16.mxu1 %v5301_v0 }
  0x8f   :  { %3205 = vmatmul.mubr.msk.bf16.gmra.mxu0 %vm147_vm1, %v4007_v52  ;;  %3244 = vmatmul.mubr.msk.bf16.gmra.mxu1 %vm147_vm1, %v3957_v39 }
  0x90   :  { %741 = vmatprep.mubr.bf16.mxu0 %v5301_v0  ;;  %1024 = vmatprep.mubr.bf16.mxu1 %v5301_v0 }
  0x97   :  { %3206 = vmatmul.mubr.msk.bf16.gmra.mxu0 %vm147_vm1, %v4023_v56  ;;  %3245 = vmatmul.mubr.msk.bf16.gmra.mxu1 %vm147_vm1, %v3973_v43 }
  0x98   :  { %751 = vmatprep.mubr.bf16.mxu0 %v5301_v0  ;;  %1034 = vmatprep.mubr.bf16.mxu1 %v5301_v0 }
  0x9f   :  { %3207 = vmatmul.mubr.msk.bf16.gmra.mxu0 %vm147_vm1, %v4039_v60  ;;  %3246 = vmatmul.mubr.msk.bf16.gmra.mxu1 %vm147_vm1, %v3989_v47 }
  0xa0   :  { %761 = vmatprep.mubr.bf16.mxu0 %v5301_v0  ;;  %1044 = vmatprep.mubr.bf16.mxu1 %v5301_v0 }
  0xa7   :  { %3208 = vmatmul.mubr.msk.bf16.gmra.mxu0 %vm147_vm1, %v4055_v1  ;;  %3247 = vmatmul.mubr.msk.bf16.gmra.mxu1 %vm147_vm1, %v4005_v51 }
  0xa8   :  { %771 = vmatprep.mubr.bf16.mxu0 %v5301_v0  ;;  %1054 = vmatprep.mubr.bf16.mxu1 %v5301_v0 }
  0xaf   :  { %3209 = vmatmul.mubr.msk.bf16.gmra.mxu0 %vm147_vm1, %v4069_v5  ;;  %3248 = vmatmul.mubr.msk.bf16.gmra.mxu1 %vm147_vm1, %v4021_v55 }
  0xb0   :  { %781 = vmatprep.mubr.bf16.mxu0 %v5301_v0  ;;  %1064 = vmatprep.mubr.bf16.mxu1 %v5301_v0 }
  0xb7   :  { %3210 = vmatmul.mubr.msk.bf16.gmra.mxu0 %vm147_vm1, %v4076_v7  ;;  %3249 = vmatmul.mubr.msk.bf16.gmra.mxu1 %vm147_vm1, %v4037_v59 }
  0xb8   :  { %791 = vmatprep.mubr.bf16.mxu0 %v5301_v0  ;;  %1074 = vmatprep.mubr.bf16.mxu1 %v5301_v0 }
  0xbf   :  { %3211 = vmatmul.mubr.msk.bf16.gmra.mxu0 %vm147_vm1, %v4086_v13  ;;  %3250 = vmatmul.mubr.msk.bf16.gmra.mxu1 %vm147_vm1, %v4053_v63 }
  0xc0   :  { %801 = vmatprep.mubr.bf16.mxu0 %v5301_v0  ;;  %1084 = vmatprep.mubr.bf16.mxu1 %v5301_v0 }
  0xc7   :  { %3212 = vmatmul.mubr.msk.bf16.gmra.mxu0 %vm147_vm1, %v4152_v14  ;;  %3251 = vmatmul.mubr.msk.bf16.gmra.mxu1 %vm147_vm1, %v122_v4 }
  0xc8   :  { %1094 = vmatprep.mubr.bf16.mxu1 %v5301_v0  ;;  %1297 = vmatprep.mubr.bf16.mxu0 %v5301_v0 }
  0xcf   :  { %3252 = vmatmul.mubr.msk.bf16.gmra.mxu1 %vm147_vm1, %v3905_v15  ;;  %3283 = vmatmul.mubr.msk.bf16.vlgmr.msra.gmra.mxu0 %vm147_vm1, %v3959_v40 }
  0xd0   :  { %1104 = vmatprep.mubr.bf16.mxu1 %v5301_v0  ;;  %1307 = vmatprep.mubr.bf16.mxu0 %v5301_v0 }
  0xd7   :  { %v225_v17 = vpop.f32.mrf.mxu0  ;;  %v4171_v18 = vpop.f32.mrf.mxu1  ;;  %3253 = vmatmul.mubr.msk.bf16.gmra.mxu1 %vm147_vm1, %v896_v16  ;;  %3284 = vmatmul.mubr.msk.bf16.gmra.mxu0 %vm147_vm1, %v3975_v44 }
  0xd8   :  { %1317 = vmatprep.mubr.bf16.mxu0 %v5301_v0  ;;  %1779 = vmatprep.mubr.bf16.mxu1 %v5301_v0 }
  0xd9   :  { %v227_v15 = vpop.f32.mrf.mxu0  ;;  %v4178_v19 = vpop.f32.mrf.mxu1 }
  0xdb   :  { %v229_v20 = vpop.f32.mrf.mxu0  ;;  %v4180_v21 = vpop.f32.mrf.mxu1 }
  0xdd   :  { %v4182_v22 = vpop.f32.mrf.mxu0  ;;  %v4184_v23 = vpop.f32.mrf.mxu1 }
  0xde   :  { %5308 = vst [vmem:[#allocation6_spill] sm:$0xff] %v4184_v23 }
  0xdf   :  { %v235_v24 = vpop.f32.mrf.mxu0  ;;  %v438_v25 = vpop.f32.mrf.mxu1  ;;  %3285 = vmatmul.mubr.msk.bf16.gmra.mxu0 %vm147_vm1, %v3991_v48 }
  0xe0   :  { %v4188_v26 = vadd.f32 %v438_v25, %v225_v17  ;;  %1327 = vmatprep.mubr.bf16.mxu0 %v5301_v0  ;;  %v3662_v17 = vld [vmem:[%s5294_s3 + $0xdc] ss:$8 sps:$4 sm:$0xff]  }
  0xe1   :  { %v237_v27 = vpop.f32.mrf.mxu0  ;;  %v440_v28 = vpop.f32.mrf.mxu1 }
  0xe2   :  { %v4191_v29 = vadd.f32 %v440_v28, %v227_v15 }
  0xe3   :  { %v239_v30 = vpop.f32.mrf.mxu0  ;;  %v442_v31 = vpop.f32.mrf.mxu1 }
  0xe4   :  { %v4193_v32 = vadd.f32 %v442_v31, %v229_v20 }
  0xe5   :  { %v4195_v33 = vpop.f32.mrf.mxu0  ;;  %v4197_v34 = vpop.f32.mrf.mxu1 }
  0xe7   :  { %v245_v35 = vpop.f32.mrf.mxu0  ;;  %v448_v36 = vpop.f32.mrf.mxu1  ;;  %3286 = vmatmul.mubr.msk.bf16.gmra.mxu0 %vm147_vm1, %v4007_v52  ;;  %v3309_v52 = vld [vmem:[%s5294_s3 + $0xe8] sm:$0xff] }
  0xe8   :  { %v4201_v37 = vadd.f32 %v448_v36, %v235_v24  ;;  %1337 = vmatprep.mubr.bf16.mxu0 %v5301_v0  ;;  %v3325_v55 = vcombine.high %v3309_v52, %v3309_v52  ;;  %v3324_v58 = vcombine.low %v3309_v52, %v3309_v52 }
  0xe9   :  { %v247_v38 = vpop.f32.mrf.mxu0  ;;  %v450_v39 = vpop.f32.mrf.mxu1 }
  0xea   :  { %v4204_v40 = vadd.f32 %v450_v39, %v237_v27  ;;  %3326 = vmatprep.subr.msk.bf16.mxu1 %vm1740_vm2, %v3325_v55  ;;  %v1742_v61 = vsel %vm1740_vm2, %v3324_v58, 0 }
  0xeb   :  { %v249_v41 = vpop.f32.mrf.mxu0  ;;  %v452_v42 = vpop.f32.mrf.mxu1  ;;  %1748 = vmatpush1.bf16.msra.mxu1 %v1742_v61 }
  0xec   :  { %v4206_v43 = vadd.f32 %v452_v42, %v239_v30  ;;  %1749 = vmatprep.subr.bf16.mxu1 %v3662_v17 }
  0xed   :  { %v4208_v44 = vpop.f32.mrf.mxu0  ;;  %v4210_v45 = vpop.f32.mrf.mxu1 }
  0xee   :  { %5309 = vst [vmem:[#allocation7_spill] sm:$0xff] %v4208_v44  ;;  %5310 = vst [vmem:[#allocation8_spill] sm:$0xff] %v4210_v45 }
  0xef   :  { %v255_v46 = vpop.f32.mrf.mxu0  ;;  %v458_v47 = vpop.f32.mrf.mxu1  ;;  %3287 = vmatmul.mubr.msk.bf16.gmra.mxu0 %vm147_vm1, %v4023_v56 }
  0xf0   :  { %v4214_v48 = vadd.f32 %v458_v47, %v245_v35  ;;  %1347 = vmatprep.mubr.bf16.mxu0 %v5301_v0 }
  0xf1   :  { %v257_v49 = vpop.f32.mrf.mxu0  ;;  %v460_v50 = vpop.f32.mrf.mxu1 }
  0xf2   :  { %v4217_v51 = vadd.f32 %v460_v50, %v247_v38  ;;  %v3665_v50 = vld [vmem:[%s5294_s3 + $0xcc] ss:$8 sps:$4 sm:$0xff]  }
  0xf3   :  { %v259_v53 = vpop.f32.mrf.mxu0  ;;  %v462_v54 = vpop.f32.mrf.mxu1 }
  0xf4   :  { %v4222_v57 = vadd.f32 %v462_v54, %v249_v41 }
  0xf5   :  { %v4224_v56 = vpop.f32.mrf.mxu0  ;;  %v4226_v59 = vpop.f32.mrf.mxu1 }
  0xf6   :  { %5311 = vst [vmem:[#allocation9_spill] sm:$0xff] %v4226_v59  ;;  %v3698_v59 = vld [vmem:[%s5294_s3 + $0x178] ss:$8 sps:$4 sm:$0xff]  }
  0xf7   :  { %v265_v62 = vpop.f32.mrf.mxu0  ;;  %v468_v63 = vpop.f32.mrf.mxu1  ;;  %3288 = vmatmul.mubr.msk.bf16.gmra.mxu0 %vm147_vm1, %v4039_v60  ;;  %v3660_v60 = vld [vmem:[%s5294_s3 + $0xd8] ss:$8 sps:$4 sm:$0xff]  }
  0xf8   :  { %v4232_v2 = vadd.f32 %v468_v63, %v255_v46  ;;  %1357 = vmatprep.mubr.bf16.mxu0 %v5301_v0  ;;  %1750 = vmatpush1.bf16.msra.mxu1 %v3660_v60 }
  0xf9   :  { %v267_v3 = vpop.f32.mrf.mxu0  ;;  %v470_v4 = vpop.f32.mrf.mxu1  ;;  %1751 = vmatprep.subr.bf16.mxu1 %v3665_v50 }
  0xfa   :  { %v4235_v6 = vadd.f32 %v470_v4, %v257_v49  ;;  %v3663_v49 = vld [vmem:[%s5294_s3 + $0xc8] ss:$8 sps:$4 sm:$0xff]  }
  0xfb   :  { %v269_v10 = vpop.f32.mrf.mxu0  ;;  %v472_v11 = vpop.f32.mrf.mxu1 }
  0xfc   :  { %v4237_v12 = vadd.f32 %v472_v11, %v259_v53  ;;  %1752 = vmatpush1.bf16.msra.mxu1 %v3663_v49 }
  0xfd   :  { %v4239_v8 = vpop.f32.mrf.mxu0  ;;  %v4241_v16 = vpop.f32.mrf.mxu1 }
  0xff   :  { %v275_v15 = vpop.f32.mrf.mxu0  ;;  %v478_v20 = vpop.f32.mrf.mxu1  ;;  %3289 = vmatmul.mubr.msk.bf16.gmra.mxu0 %vm147_vm1, %v4055_v1 }
 0x100   :  { %v4251_v24 = vadd.f32 %v478_v20, %v265_v62  ;;  %1367 = vmatprep.mubr.bf16.mxu0 %v5301_v0 }
 0x101   :  { %v277_v25 = vpop.f32.mrf.mxu0  ;;  %v480_v27 = vpop.f32.mrf.mxu1 }
 0x102   :  { %v4254_v28 = vadd.f32 %v480_v27, %v267_v3 }
 0x103   :  { %v279_v30 = vpop.f32.mrf.mxu0  ;;  %v482_v31 = vpop.f32.mrf.mxu1 }
 0x104   :  { %v4256_v35 = vadd.f32 %v482_v31, %v269_v10 }
 0x105   :  { %v4258_v36 = vpop.f32.mrf.mxu0  ;;  %v4260_v38 = vpop.f32.mrf.mxu1 }
 0x107   :  { %v285_v39 = vpop.f32.mrf.mxu0  ;;  %v488_v1 = vpop.f32.mrf.mxu1  ;;  %3290 = vmatmul.mubr.msk.bf16.gmra.mxu0 %vm147_vm1, %v4069_v5 }
 0x108   :  { %v4264_v41 = vadd.f32 %v488_v1, %v275_v15  ;;  %1377 = vmatprep.mubr.bf16.mxu0 %v5301_v0 }
 0x109   :  { %v287_v42 = vpop.f32.mrf.mxu0  ;;  %v490_v46 = vpop.f32.mrf.mxu1 }
 0x10a   :  { %v4267_v47 = vadd.f32 %v490_v46, %v277_v25 }
 0x10b   :  { %v289_v52 = vpop.f32.mrf.mxu0  ;;  %v492_v53 = vpop.f32.mrf.mxu1 }
 0x10c   :  { %v4275_v54 = vadd.f32 %v492_v53, %v279_v30  ;;  %v3277_v53 = vld [vmem:[%s5291_s0 + $0xd8] sm:$0xff] }
 0x10d   :  { %v4277_v5 = vpop.f32.mrf.mxu0  ;;  %v4279_v55 = vpop.f32.mrf.mxu1 }
 0x10f   :  { %v295_v58 = vpop.f32.mrf.mxu0  ;;  %v498_v61 = vpop.f32.mrf.mxu1  ;;  %3291 = vmatmul.mubr.msk.bf16.gmra.mxu0 %vm147_vm1, %v4076_v7 }
 0x110   :  { %v4283_v62 = vadd.f32 %v498_v61, %v285_v39  ;;  %1387 = vmatprep.mubr.bf16.mxu0 %v5301_v0  ;;  %v3668_v61 = vld [vmem:[%s5294_s3 + $0xbc] ss:$8 sps:$4 sm:$0xff]  }
 0x111   :  { %v297_v63 = vpop.f32.mrf.mxu0  ;;  %v500_v3 = vpop.f32.mrf.mxu1  ;;  %1753 = vmatprep.subr.bf16.mxu1 %v3668_v61  ;;  %v5317_v61 = vmov 0  }
 0x112   :  { %v4286_v4 = vadd.f32 %v500_v3, %v287_v42 }
 0x113   :  { %v299_v10 = vpop.f32.mrf.mxu0  ;;  %v502_v11 = vpop.f32.mrf.mxu1 }
 0x114   :  { %v4288_v60 = vadd.f32 %v502_v11, %v289_v52 }
 0x115   :  { %v4290_v17 = vpop.f32.mrf.mxu0  ;;  %v4292_v15 = vpop.f32.mrf.mxu1 }
 0x116   :  { %5312 = vst [vmem:[#allocation10_spill] sm:$0xff] %v4290_v17 }
 0x117   :  { %v305_v20 = vpop.f32.mrf.mxu0  ;;  %v508_v25 = vpop.f32.mrf.mxu1  ;;  %3292 = vmatmul.mubr.msk.bf16.gmra.mxu0 %vm147_vm1, %v4086_v13 }
 0x118   :  { %v4296_v7 = vadd.f32 %v508_v25, %v295_v58  ;;  %1397 = vmatprep.mubr.bf16.mxu0 %v5301_v0  ;;  %v3666_v58 = vld [vmem:[%s5294_s3 + $0xb8] ss:$8 sps:$4 sm:$0xff]  }
 0x119   :  { %v307_v27 = vpop.f32.mrf.mxu0  ;;  %v510_v30 = vpop.f32.mrf.mxu1  ;;  %1754 = vmatpush1.bf16.msra.mxu1 %v3666_v58  ;;  %v3671_v58 = vld [vmem:[%s5294_s3 + $0xac] ss:$8 sps:$4 sm:$0xff]  }
 0x11a   :  { %v4299_v31 = vadd.f32 %v510_v30, %v297_v63  ;;  %1755 = vmatprep.subr.bf16.mxu1 %v3671_v58 }
 0x11b   :  { %v309_v39 = vpop.f32.mrf.mxu0  ;;  %v512_v1 = vpop.f32.mrf.mxu1 }
 0x11c   :  { %v4301_v42 = vadd.f32 %v512_v1, %v299_v10 }
 0x11d   :  { %v4303_v46 = vpop.f32.mrf.mxu0  ;;  %v4305_v49 = vpop.f32.mrf.mxu1 }
 0x11e   :  { %5313 = vst [vmem:[#allocation11_spill] sm:$0xff] %v4303_v46  ;;  %5314 = vst [vmem:[#allocation12_spill] sm:$0xff] %v4305_v49 }
 0x11f   :  { %v315_v50 = vpop.f32.mrf.mxu0  ;;  %v518_v52 = vpop.f32.mrf.mxu1  ;;  %3293 = vmatmul.mubr.msk.bf16.gmra.mxu0 %vm147_vm1, %v4152_v14 }
 0x120   :  { %v4309_v13 = vadd.f32 %v518_v52, %v305_v20  ;;  %1407 = vmatprep.mubr.bf16.mxu0 %v5301_v0  ;;  %v1199_v20 = vpack.c.bf16 %v3277_v53, %v4168_v9 }
 0x121   :  { %v317_v63 = vpop.f32.mrf.mxu0  ;;  %v520_v3 = vpop.f32.mrf.mxu1 }
 0x122   :  { %v4321_v10 = vadd.f32 %v520_v3, %v307_v27  ;;  %v3402_v27 = vld [vmem:[%s5294_s3 + $0x1d8] sm:$0xff] }
 0x123   :  { %v319_v14 = vpop.f32.mrf.mxu0  ;;  %v522_v11 = vpop.f32.mrf.mxu1  ;;  %v3418_v3 = vcombine.high %v3402_v27, %v3402_v27 }
 0x124   :  { %v4324_v25 = vadd.f32 %v522_v11, %v309_v39  ;;  %v3669_v39 = vld [vmem:[%s5294_s3 + $0xa8] ss:$8 sps:$4 sm:$0xff]   ;;  %v3417_v11 = vcombine.low %v3402_v27, %v3402_v27  ;;  %v3679_v27 = vld [vmem:[%s5294_s3 + $0x1cc] ss:$8 sps:$4 sm:$0xff]  }
 0x125   :  { %v4326_v30 = vpop.f32.mrf.mxu0  ;;  %v4328_v1 = vpop.f32.mrf.mxu1  ;;  %3419 = vmatprep.subr.msk.bf16.mxu0 %vm1740_vm2, %v3418_v3  ;;  %1756 = vmatpush1.bf16.msra.mxu1 %v3669_v39 }
 0x126   :  { %5315 = vst [vmem:[#allocation13_spill] sm:$0xff] %v4326_v30  ;;  %5316 = vst [vmem:[#allocation14_spill] sm:$0xff] %v4328_v1  ;;  %v2312_v30 = vsel %vm1740_vm2, %v3417_v11, 0 }
 0x127   :  { %v325_v52 = vpop.f32.mrf.mxu0  ;;  %v528_v0 = vpop.f32.mrf.mxu1  ;;  %3294 = vmatmul.mubr.msk.bf16.gmra.mxu0 %vm147_vm1, %v1199_v20 }
 0x128   :  { %v4331_v23 = vadd.f32 %v528_v0, %v315_v50  ;;  %2349 = vmatprep.mubr.bf16.mxu0 %v5317_v61  ;;  %2318 = vmatpush1.bf16.msra.mxu0 %v2312_v30 }
 0x129   :  { %v327_v9 = vpop.f32.mrf.mxu0  ;;  %v530_v53 = vpop.f32.mrf.mxu1  ;;  %2319 = vmatprep.subr.bf16.mxu0 %v3679_v27 }
 0x12a   :  { %v4343_v0 = vadd.f32 %v530_v53, %v317_v63  ;;  %v3676_v63 = vld [vmem:[%s5294_s3 + $0x9c] ss:$8 sps:$4 sm:$0xff]   ;;  %v3674_v53 = vld [vmem:[%s5294_s3 + $0x98] ss:$8 sps:$4 sm:$0xff]  }
 0x12b   :  { %v329_v50 = vpop.f32.mrf.mxu0  ;;  %v532_v20 = vpop.f32.mrf.mxu1  ;;  %1757 = vmatprep.subr.bf16.mxu1 %v3676_v63  ;;  %v3683_v63 = vld [vmem:[%s5294_s3 + $0x1b8] ss:$8 sps:$4 sm:$0xff]  }
 0x12c   :  { %v4347_v1 = vadd.f32 %v532_v20, %v319_v14  ;;  %v3677_v14 = vld [vmem:[%s5294_s3 + $0x1c8] ss:$8 sps:$4 sm:$0xff]   ;;  %1758 = vmatpush1.bf16.msra.mxu1 %v3674_v53 }
 0x12d   :  { %v4349_v46 = vpop.f32.mrf.mxu0  ;;  %v4351_v49 = vpop.f32.mrf.mxu1  ;;  %2320 = vmatpush1.bf16.msra.mxu0 %v3677_v14 }
 0x12e   :  { %5318 = vst [vmem:[#allocation15_spill] sm:$0xff] %v4349_v46  ;;  %5319 = vst [vmem:[#allocation16_spill] sm:$0xff] %v4351_v49  ;;  %v3682_v46 = vld [vmem:[%s5294_s3 + $0x8c] ss:$8 sps:$4 sm:$0xff]   ;;  %v3685_v49 = vld [vmem:[%s5294_s3 + $0x1bc] ss:$8 sps:$4 sm:$0xff]  }
 0x12f   :  { %v538_v30 = vpop.f32.mrf.mxu1  ;;  %v693_v39 = vpop.f32.mrf.mxu0  ;;  %1759 = vmatprep.subr.bf16.mxu1 %v3682_v46  ;;  %2321 = vmatprep.subr.bf16.mxu0 %v3685_v49  ;;  %v3691_v46 = vld [vmem:[%s5294_s3 + $0x1ac] ss:$8 sps:$4 sm:$0xff]   ;;  %v3686_v49 = vld [vmem:[%s5294_s3 + $0x78] ss:$8 sps:$4 sm:$0xff]  }
 0x130   :  { %v4365_v58 = vadd.f32 %v538_v30, %v325_v52  ;;  %v4368_v3 = vadd.f32 %v693_v39, %v4188_v26  ;;  %v3680_v26 = vld [vmem:[%s5294_s3 + $0x88] ss:$8 sps:$4 sm:$0xff]   ;;  %v3688_v39 = vld [vmem:[%s5294_s3 + $0x7c] ss:$8 sps:$4 sm:$0xff]  }
 0x131   :  { %v540_v11 = vpop.f32.mrf.mxu1  ;;  %v695_v20 = vpop.f32.mrf.mxu0  ;;  %1760 = vmatpush1.bf16.msra.mxu1 %v3680_v26  ;;  %2322 = vmatpush1.bf16.msra.mxu0 %v3683_v63 }
 0x132   :  { %v4376_v17 = vadd.f32 %v540_v11, %v327_v9  ;;  %v4379_v52 = vadd.f32 %v695_v20, %v4191_v29  ;;  %1761 = vmatprep.subr.bf16.mxu1 %v3688_v39  ;;  %2323 = vmatprep.subr.bf16.mxu0 %v3691_v46  ;;  %v3692_v39 = vld [vmem:[%s5294_s3 + $0x198] ss:$8 sps:$4 sm:$0xff]  }
 0x133   :  { %v542_v27 = vpop.f32.mrf.mxu1  ;;  %v697_v53 = vpop.f32.mrf.mxu0 }
 0x134   :  { %v4387_v14 = vadd.f32 %v542_v27, %v329_v50  ;;  %v4390_v9 = vadd.f32 %v697_v53, %v4193_v32  ;;  %v3689_v32 = vld [vmem:[%s5294_s3 + $0x1a8] ss:$8 sps:$4 sm:$0xff]   ;;  %v3694_v27 = vld [vmem:[%s5294_s3 + $0x19c] ss:$8 sps:$4 sm:$0xff]  }
 0x135   :  { %v4392_v29 = vpop.f32.mrf.mxu1  ;;  %v4394_v30 = vpop.f32.mrf.mxu0  ;;  %1762 = vmatpush1.bf16.msra.mxu1 %v3686_v49  ;;  %2324 = vmatpush1.bf16.msra.mxu0 %v3689_v32 }
 0x136   :  { %5320 = vst [vmem:[#allocation17_spill] sm:$0xff] %v4392_v29  ;;  %2325 = vmatprep.subr.bf16.mxu0 %v3694_v27 }
 0x137   :  { %v4408_v50 = vpop.f32.mrf.mxu1  ;;  %v703_v11 = vpop.f32.mrf.mxu0 }
 0x138   :  { %v4411_v20 = vadd.f32 %v703_v11, %v4201_v37 }
 0x139   :  { %v4413_v26 = vpop.f32.mrf.mxu1  ;;  %v705_v63 = vpop.f32.mrf.mxu0  ;;  %2326 = vmatpush1.bf16.msra.mxu0 %v3692_v39 }
 0x13a   :  { %v4419_v53 = vadd.f32 %v705_v63, %v4204_v40  ;;  %v3697_v40 = vld [vmem:[%s5294_s3 + $0x18c] ss:$8 sps:$4 sm:$0xff]   ;;  %v3695_v63 = vld [vmem:[%s5294_s3 + $0x188] ss:$8 sps:$4 sm:$0xff]  }
 0x13b   :  { %v4424_v46 = vpop.f32.mrf.mxu1  ;;  %v707_v37 = vpop.f32.mrf.mxu0  ;;  %2327 = vmatprep.subr.bf16.mxu0 %v3697_v40 }
 0x13c   :  { %v4427_v49 = vadd.f32 %v707_v37, %v4206_v43  ;;  %v3700_v37 = vld [vmem:[%s5294_s3 + $0x17c] ss:$8 sps:$4 sm:$0xff]  }
 0x13d   :  { %v4429_v32 = vpop.f32.mrf.mxu1  ;;  %v4431_v11 = vpop.f32.mrf.mxu0  ;;  %2328 = vmatpush1.bf16.msra.mxu0 %v3695_v63 }
 0x13e   :  { %5321 = vst [vmem:[#allocation18_spill] sm:$0xff] %v4427_v49  ;;  %5322 = vst [vmem:[#allocation19_spill] sm:$0xff] %v4429_v32  ;;  %2329 = vmatprep.subr.bf16.mxu0 %v3700_v37  ;;  %v475_v49 = vadd.f32 %v4241_v16, %v4224_v56 }
 0x13f   :  { %5323 = vst [vmem:[#allocation20_spill] sm:$0xff] %v4431_v11  ;;  %v713_v29 = vpop.f32.mrf.mxu0  ;;  %v4439_v61 = vpop.f32.mrf.mxu1 }
 0x140   :  { %v4442_v43 = vadd.f32 %v713_v29, %v4214_v48 }
 0x141   :  { %v715_v27 = vpop.f32.mrf.mxu0  ;;  %v4444_v39 = vpop.f32.mrf.mxu1  ;;  %2330 = vmatpush1.bf16.msra.mxu0 %v3698_v59 }
 0x142   :  { %5324 = vst [vmem:[#allocation21_spill] sm:$0xff] %v4442_v43  ;;  %v4450_v32 = vadd.f32 %v715_v27, %v4217_v51  ;;  %v3703_v51 = vld [vmem:[%s5294_s3 + $0x16c] ss:$8 sps:$4 sm:$0xff]   ;;  %v3701_v27 = vld [vmem:[%s5294_s3 + $0x168] ss:$8 sps:$4 sm:$0xff]  }
 0x143   :  { %v717_v44 = vpop.f32.mrf.mxu0  ;;  %v4455_v40 = vpop.f32.mrf.mxu1  ;;  %2331 = vmatprep.subr.bf16.mxu0 %v3703_v51 }
 0x144   :  { %5325 = vst [vmem:[#allocation22_spill] sm:$0xff] %v4450_v32  ;;  %v4458_v48 = vadd.f32 %v717_v44, %v4222_v57 }
 0x145   :  { %v4460_v29 = vpop.f32.mrf.mxu0  ;;  %v4462_v63 = vpop.f32.mrf.mxu1  ;;  %2332 = vmatpush1.bf16.msra.mxu0 %v3701_v27 }
 0x146   :  { %5326 = vst [vmem:[#allocation23_spill] sm:$0xff] %v4458_v48  ;;  %5327 = vst [vmem:[#allocation24_spill] sm:$0xff] %v4460_v29 }
 0x147   :  { %v723_v32 = vpop.f32.mrf.mxu0  ;;  %v4470_v43 = vpop.f32.mrf.mxu1 }
 0x148   :  { %v4473_v44 = vadd.f32 %v723_v32, %v4232_v2 }
 0x149   :  { %v725_v57 = vpop.f32.mrf.mxu0  ;;  %v4475_v59 = vpop.f32.mrf.mxu1 }
 0x14a   :  { %v4478_v37 = vadd.f32 %v725_v57, %v4235_v6  ;;  %v4499_v57 = vld [vmem:[%s5294_s3 + $0x70] sm:$0xff] }
 0x14b   :  { %v727_v48 = vpop.f32.mrf.mxu0  ;;  %v4480_v29 = vpop.f32.mrf.mxu1  ;;  %5332 = vst [vmem:[#allocation29_spill] sm:$0xff] %v4499_v57 }
 0x14c   :  { %5328 = vst [vmem:[#allocation25_spill] sm:$0xff] %v4478_v37  ;;  %v4485_v11 = vadd.f32 %v727_v48, %v4237_v12  ;;  %v3346_v12 = vcombine.high %v4499_v57, %v4499_v57 }
 0x14d   :  { %v729_v51 = vpop.f32.mrf.mxu0  ;;  %v4487_v45 = vpop.f32.mrf.mxu1 }
 0x14e   :  { %5329 = vst [vmem:[#allocation26_spill] sm:$0xff] %v4485_v11  ;;  %v4489_v2 = vadd.f32 %v729_v51, %v475_v49  ;;  %3347 = vmatprep.subr.msk.bf16.mxu1 %vm1740_vm2, %v3346_v12 }
 0x14f   :  { %v733_v32 = vpop.f32.mrf.mxu0  ;;  %v4491_v27 = vpop.f32.mrf.mxu1 }
 0x150   :  { %5330 = vst [vmem:[#allocation27_spill] sm:$0xff] %v4489_v2  ;;  %v4494_v6 = vadd.f32 %v733_v32, %v4251_v24  ;;  %v485_v24 = vadd.f32 %v4260_v38, %v4239_v8  ;;  %v495_v8 = vadd.f32 %v4279_v55, %v4258_v36  ;;  %v505_v36 = vadd.f32 %v4292_v15, %v4277_v5 }
 0x151   :  { %v735_v56 = vpop.f32.mrf.mxu0  ;;  %v4501_v16 = vpop.f32.mrf.mxu1 }
 0x152   :  { %5331 = vst [vmem:[#allocation28_spill] sm:$0xff] %v4494_v6  ;;  %v4506_v49 = vadd.f32 %v735_v56, %v4254_v28 }
 0x153   :  { %v737_v48 = vpop.f32.mrf.mxu0  ;;  %v4514_v32 = vpop.f32.mrf.mxu1 }
 0x154   :  { %v4512_v51 = vadd.f32 %v737_v48, %v4256_v35 }
 0x155   :  { %v739_v6 = vpop.f32.mrf.mxu0  ;;  %v4518_v37 = vpop.f32.mrf.mxu1 }
 0x156   :  { %v4516_v2 = vadd.f32 %v739_v6, %v485_v24 }
 0x157   :  { %v743_v11 = vpop.f32.mrf.mxu0  ;;  %v4528_v35 = vpop.f32.mrf.mxu1 }
 0x158   :  { %5333 = vst [vmem:[#allocation30_spill] sm:$0xff] %v4516_v2  ;;  %v4521_v28 = vadd.f32 %v743_v11, %v4264_v41 }
 0x159   :  { %v745_v56 = vpop.f32.mrf.mxu0  ;;  %v4535_v2 = vpop.f32.mrf.mxu1 }
 0x15a   :  { %v4524_v12 = vadd.f32 %v745_v56, %v4267_v47 }
 0x15b   :  { %v747_v57 = vpop.f32.mrf.mxu0  ;;  %v4545_v55 = vpop.f32.mrf.mxu1 }
 0x15c   :  { %v4531_v38 = vadd.f32 %v747_v57, %v4275_v54 }
 0x15d   :  { %v749_v6 = vpop.f32.mrf.mxu0 }
 0x15e   :  { %v4533_v48 = vadd.f32 %v749_v6, %v495_v8 }
 0x15f   :  { %v753_v24 = vpop.f32.mrf.mxu0 }
 0x160   :  { %5334 = vst [vmem:[#allocation31_spill] sm:$0xff] %v4533_v48  ;;  %v4538_v41 = vadd.f32 %v753_v24, %v4283_v62  ;;  %v4552_v48 = vpop.f32.mrf.mxu1 }
 0x161   :  { %v755_v47 = vpop.f32.mrf.mxu0 }
 0x162   :  { %v4541_v11 = vadd.f32 %v755_v47, %v4286_v4  ;;  %v4560_v5 = vpop.f32.mrf.mxu1 }
 0x163   :  { %v757_v56 = vpop.f32.mrf.mxu0 }
 0x164   :  { %v4548_v54 = vadd.f32 %v757_v56, %v4288_v60 }
 0x165   :  { %v759_v57 = vpop.f32.mrf.mxu0 }
 0x166   :  { %v4550_v8 = vadd.f32 %v759_v57, %v505_v36  ;;  %v4567_v36 = vpop.f32.mrf.mxu1 }
 0x167   :  { %v763_v6 = vpop.f32.mrf.mxu0 }
 0x168   :  { %v4555_v62 = vadd.f32 %v763_v6, %v4296_v7 }
 0x169   :  { %v765_v4 = vpop.f32.mrf.mxu0 }
 0x16a   :  { %v4558_v24 = vadd.f32 %v765_v4, %v4299_v31  ;;  %v4575_v4 = vpop.f32.mrf.mxu1 }
 0x16b   :  { %v767_v47 = vpop.f32.mrf.mxu0 }
 0x16c   :  { %5335 = vst [vmem:[#allocation32_spill] sm:$0xff] %v4558_v24  ;;  %v4563_v15 = vadd.f32 %v767_v47, %v4301_v42 }
 0x16d   :  { %v4565_v60 = vpop.f32.mrf.mxu0 }
 0x16e   :  { %5336 = vst [vmem:[#allocation33_spill] sm:$0xff] %v4563_v15  ;;  %5337 = vst [vmem:[#allocation34_spill] sm:$0xff] %v4565_v60  ;;  %v4582_v15 = vpop.f32.mrf.mxu1 }
 0x16f   :  { %v773_v56 = vpop.f32.mrf.mxu0 }
 0x170   :  { %v4570_v57 = vadd.f32 %v773_v56, %v4309_v13 }
 0x171   :  { %v775_v7 = vpop.f32.mrf.mxu0 }
 0x172   :  { %v4573_v6 = vadd.f32 %v775_v7, %v4321_v10  ;;  %v4590_v7 = vpop.f32.mrf.mxu1 }
 0x173   :  { %v777_v31 = vpop.f32.mrf.mxu0 }
 0x174   :  { %5338 = vst [vmem:[#allocation35_spill] sm:$0xff] %v4573_v6  ;;  %v4578_v24 = vadd.f32 %v777_v31, %v4324_v25 }
 0x175   :  { %v4580_v42 = vpop.f32.mrf.mxu0 }
 0x176   :  { %5339 = vst [vmem:[#allocation36_spill] sm:$0xff] %v4578_v24  ;;  %5340 = vst [vmem:[#allocation37_spill] sm:$0xff] %v4580_v42  ;;  %v4597_v24 = vpop.f32.mrf.mxu1 }
 0x177   :  { %v783_v47 = vpop.f32.mrf.mxu0 }
 0x178   :  { %v4585_v60 = vadd.f32 %v783_v47, %v4331_v23 }
 0x179   :  { %v785_v13 = vpop.f32.mrf.mxu0 }
 0x17a   :  { %v4588_v56 = vadd.f32 %v785_v13, %v4343_v0  ;;  %v4605_v13 = vpop.f32.mrf.mxu1 }
 0x17b   :  { %v787_v10 = vpop.f32.mrf.mxu0 }
 0x17c   :  { %5341 = vst [vmem:[#allocation38_spill] sm:$0xff] %v4588_v56  ;;  %v4593_v6 = vadd.f32 %v787_v10, %v4347_v1  ;;  %v1468_v1 = vlaneseq }
 0x17d   :  { %v4595_v25 = vpop.f32.mrf.mxu0 }
 0x17e   :  { %5342 = vst [vmem:[#allocation39_spill] sm:$0xff] %v4593_v6  ;;  %5343 = vst [vmem:[#allocation40_spill] sm:$0xff] %v4595_v25  ;;  %v549_v6 = vadd.f32 %v4408_v50, %v4171_v18 }
 0x17f   :  { %v793_v31 = vpop.f32.mrf.mxu0 }
 0x180   :  { %v4600_v42 = vadd.f32 %v793_v31, %v4365_v58  ;;  %v551_v58 = vadd.f32 %v4413_v26, %v4178_v19  ;;  %v4616_v31 = vpop.f32.mrf.mxu1 }
 0x181   :  { %v795_v23 = vpop.f32.mrf.mxu0 }
 0x182   :  { %v4603_v47 = vadd.f32 %v795_v23, %v4376_v17  ;;  %v4620_v23 = vshrl.u32 %v1468_v1, 7 }
 0x183   :  { %v797_v0 = vpop.f32.mrf.mxu0 }
 0x184   :  { %5344 = vst [vmem:[#allocation41_spill] sm:$0xff] %v4603_v47  ;;  %v4608_v56 = vadd.f32 %v797_v0, %v4387_v14  ;;  %5347 = vst [vmem:[#allocation44_spill] sm:$0xff] %v4620_v23  ;;  %v553_v14 = vadd.f32 %v4424_v46, %v4180_v21  ;;  %v5304_v50 = vsub.s32 0, %v4620_v23  ;;  %v5307_v19 = vsub.s32 1, %v4620_v23 }
 0x185   :  { %v4610_v10 = vpop.f32.mrf.mxu0  ;;  %v1115_v21 = vadd.f32 %v4439_v61, %v4368_v3  ;;  %v445_v46 = vadd.f32 %v4197_v34, %v4182_v22  ;;  %v1117_v22 = vadd.f32 %v4455_v40, %v4390_v9  ;;  %v1120_v9 = vadd.f32 %v4475_v59, %v4419_v53 }
 0x186   :  { %5345 = vst [vmem:[#allocation42_spill] sm:$0xff] %v4608_v56  ;;  %5346 = vst [vmem:[#allocation43_spill] sm:$0xff] %v4610_v10  ;;  %v4626_v10 = vpop.f32.mrf.mxu1 }
 0x187   :  { %v803_v25 = vpop.f32.mrf.mxu0  ;;  %v815_v61 = vadd.f32 %v4394_v30, %v445_v46 }
 0x188   :  { %v4618_v17 = vadd.f32 %v803_v25, %v549_v6  ;;  %v1466_v6 = vld [vmem:[%s5293_s2] sm:$0x3] }
 0x189   :  { %v805_v47 = vpop.f32.mrf.mxu0 }
 0x18a   :  { %v4624_v0 = vadd.f32 %v805_v47, %v551_v58  ;;  %v4643_v47 = vpop.f32.mrf.mxu1  ;;  %v4647_v58 = vrot.slane %v1466_v6, %v5304_v50 }
 0x18b   :  { %v807_v56 = vpop.f32.mrf.mxu0 }
 0x18c   :  { %v4628_v18 = vadd.f32 %v807_v56, %v553_v14  ;;  %v1116_v56 = vadd.f32 %v4444_v39, %v4379_v52  ;;  %v4651_v14 = vrot.slane %v1466_v6, %v5307_v19  ;;  %v1118_v52 = vadd.f32 %v4462_v63, %v815_v61  ;;  %v4657_v39 = vpop.f32.mrf.mxu1 }
 0x18d   :  { %v4632_v26 = vpop.f32.mrf.mxu0  ;;  %v1119_v6 = vadd.f32 %v4470_v43, %v4411_v20  ;;  %v5350_v20 = vld [vmem:[#allocation20_spill] sm:$0xff] }
 0x18e   :  { %5348 = vst [vmem:[#allocation45_spill] sm:$0xff] %v4628_v18  ;;  %v4665_v40 = vpop.f32.mrf.mxu1 }
 0x18f   :  { %v1299_v25 = vpop.f32.mrf.mxu0 }
 0x190   :  { %v1418_v1 = vadd.f32 %v1299_v25, %v1115_v21  ;;  %v4674_v53 = vpop.f32.mrf.mxu1 }
 0x191   :  { %v1301_v18 = vpop.f32.mrf.mxu0 }
 0x192   :  { %v1419_v34 = vadd.f32 %v1301_v18, %v1116_v56  ;;  %v1478_v21 = vadd.f32 %v4647_v58, %v1418_v1  ;;  %v5349_v1 = vld [vmem:[#allocation8_spill] sm:$0xff] }
 0x193   :  { %v1303_v3 = vpop.f32.mrf.mxu0  ;;  %v455_v61 = vadd.f32 %v5349_v1, %v4195_v33 }
 0x194   :  { %v1479_v25 = vadd.f32 %v4651_v14, %v1419_v34  ;;  %v1420_v50 = vadd.f32 %v1303_v3, %v1117_v22 }
 0x195   :  { %v1305_v23 = vpop.f32.mrf.mxu0  ;;  %v819_v43 = vadd.f32 %v5350_v20, %v455_v61  ;;  %v5353_v61 = vld [vmem:[#allocation7_spill] sm:$0xff] }
 0x196   :  { %v1526_v19 = vmax.f32 %v1478_v21, %v1479_v25  ;;  %v1421_v30 = vadd.f32 %v1305_v23, %v1118_v52  ;;  %v1480_v63 = vadd.f32 %v4647_v58, %v1420_v50  ;;  %v5351_v23 = vld [vmem:[#allocation18_spill] sm:$0xff] }
 0x197   :  { %v1309_v46 = vpop.f32.mrf.mxu0  ;;  %v1121_v52 = vadd.f32 %v4480_v29, %v5351_v23  ;;  %v5356_v23 = vld [vmem:[#allocation24_spill] sm:$0xff] }
 0x198   :  { %v1481_v18 = vadd.f32 %v4651_v14, %v1421_v30  ;;  %v1422_v56 = vadd.f32 %v1309_v46, %v1119_v6  ;;  %v1122_v6 = vadd.f32 %v4487_v45, %v819_v43  ;;  %v5352_v46 = vld [vmem:[#allocation21_spill] sm:$0xff] }
 0x199   :  { %v1311_v22 = vpop.f32.mrf.mxu0 }
 0x19a   :  { %v1527_v34 = vmax.f32 %v1480_v63, %v1481_v18  ;;  %v1423_v3 = vadd.f32 %v1311_v22, %v1120_v9  ;;  %v1482_v50 = vadd.f32 %v4647_v58, %v1422_v56  ;;  %v1123_v9 = vadd.f32 %v4491_v27, %v5352_v46  ;;  %v5354_v22 = vld [vmem:[#allocation9_spill] sm:$0xff] }
 0x19b   :  { %v1313_v21 = vpop.f32.mrf.mxu0  ;;  %v465_v20 = vadd.f32 %v5354_v22, %v5353_v61 }
 0x19c   :  { %v1550_v59 = vmax.f32 %v1526_v19, %v1527_v34  ;;  %v1483_v25 = vadd.f32 %v4651_v14, %v1423_v3  ;;  %v1424_v33 = vadd.f32 %v1313_v21, %v1121_v52  ;;  %v5355_v19 = vld [vmem:[#allocation22_spill] sm:$0xff]  ;;  %v4685_v34 = vpop.f32.mrf.mxu1  ;;  %v5357_v21 = vld [vmem:[#allocation23_spill] sm:$0xff] }
 0x19d   :  { %v1315_v30 = vpop.f32.mrf.mxu0  ;;  %v1124_v56 = vadd.f32 %v4501_v16, %v5355_v19  ;;  %v823_v52 = vadd.f32 %v5356_v23, %v465_v20  ;;  %v5358_v19 = vld [vmem:[#allocation25_spill] sm:$0xff] }
 0x19e   :  { %v1551_v63 = vmax.f32 %v1550_v59, 0.0  ;;  %v1528_v18 = vmax.f32 %v1482_v50, %v1483_v25  ;;  %v1425_v1 = vadd.f32 %v1315_v30, %v1122_v6  ;;  %v1484_v3 = vadd.f32 %v4647_v58, %v1424_v33  ;;  %v4694_v30 = vpop.f32.mrf.mxu1 }
 0x19f   :  { %v1319_v29 = vpop.f32.mrf.mxu0  ;;  %v1125_v59 = vadd.f32 %v4514_v32, %v5357_v21  ;;  %v1126_v16 = vadd.f32 %v4518_v37, %v823_v52  ;;  %v5360_v52 = vld [vmem:[#allocation27_spill] sm:$0xff] }
 0x1a0   :  { %1553 = vst.msk [vmem:[#allocation2] sm:$0xff] %vm1552_vm3, %v1551_v63  ;;  %v1426_v45 = vadd.f32 %v1319_v29, %v1123_v9  ;;  %v1485_v43 = vadd.f32 %v4651_v14, %v1425_v1  ;;  %v1127_v29 = vadd.f32 %v4528_v35, %v4473_v44  ;;  %v4702_v37 = vpop.f32.mrf.mxu1  ;;  %v1130_v21 = vadd.f32 %v4552_v48, %v5360_v52 }
 0x1a1   :  { %v1321_v27 = vpop.f32.mrf.mxu0  ;;  %v1132_v48 = vadd.f32 %v4567_v36, %v4506_v49  ;;  %v5363_v49 = vld [vmem:[#allocation29_spill] sm:$0xff] }
 0x1a2   :  { %v1427_v50 = vadd.f32 %v1321_v27, %v1124_v56  ;;  %v1529_v25 = vmax.f32 %v1484_v3, %v1485_v43  ;;  %v1486_v46 = vadd.f32 %v4647_v58, %v1426_v45  ;;  %v1128_v56 = vadd.f32 %v4535_v2, %v5358_v19  ;;  %v5359_v27 = vld [vmem:[#allocation26_spill] sm:$0xff]  ;;  %v4711_v2 = vpop.f32.mrf.mxu1 }
 0x1a3   :  { %v1323_v6 = vpop.f32.mrf.mxu0  ;;  %v1129_v44 = vadd.f32 %v4545_v55, %v5359_v27  ;;  %v3345_v36 = vcombine.low %v5363_v49, %v5363_v49 }
 0x1a4   :  { %v1487_v9 = vadd.f32 %v4651_v14, %v1427_v50  ;;  %v1428_v33 = vadd.f32 %v1323_v6, %v1125_v59  ;;  %v1554_v63 = vmax.f32 %v1528_v18, %v1529_v25 }
 0x1a5   :  { %v1325_v1 = vpop.f32.mrf.mxu0 }
 0x1a6   :  { %v1530_v61 = vmax.f32 %v1486_v46, %v1487_v9  ;;  %v1429_v22 = vadd.f32 %v1325_v1, %v1126_v16  ;;  %v1555_v32 = vmax.f32 %v1554_v63, 0.0  ;;  %v1488_v3 = vadd.f32 %v4647_v58, %v1428_v33  ;;  %v5361_v9 = vld [vmem:[#allocation28_spill] sm:$0xff] }
 0x1a7   :  { %v1329_v20 = vpop.f32.mrf.mxu0  ;;  %v1131_v33 = vadd.f32 %v4560_v5, %v5361_v9  ;;  %v1133_v5 = vadd.f32 %v4575_v4, %v4512_v51  ;;  %v1135_v51 = vadd.f32 %v4590_v7, %v4521_v28 }
 0x1a8   :  { %v1489_v45 = vadd.f32 %v4651_v14, %v1429_v22  ;;  %v1430_v43 = vadd.f32 %v1329_v20, %v1127_v29  ;;  %1557 = vst.msk [vmem:[#allocation2 + $0x8] sm:$0xff] %vm1552_vm3, %v1555_v32  ;;  %v4719_v22 = vpop.f32.mrf.mxu1 }
 0x1a9   :  { %v1331_v18 = vpop.f32.mrf.mxu0 }
 0x1aa   :  { %v1531_v35 = vmax.f32 %v1488_v3, %v1489_v45  ;;  %v1431_v23 = vadd.f32 %v1331_v18, %v1128_v56  ;;  %v1490_v25 = vadd.f32 %v4647_v58, %v1430_v43  ;;  %v5362_v45 = vld [vmem:[#allocation30_spill] sm:$0xff]  ;;  %v4730_v27 = vpop.f32.mrf.mxu1 }
 0x1ab   :  { %v1333_v59 = vpop.f32.mrf.mxu0  ;;  %v1134_v43 = vadd.f32 %v4582_v15, %v5362_v45  ;;  %v1136_v15 = vadd.f32 %v4597_v24, %v4524_v12  ;;  %v3708_v12 = vld [vmem:[%s5294_s3 + $0x64] ss:$8 sps:$4 sm:$0xff]  }
 0x1ac   :  { %v1558_v50 = vmax.f32 %v1530_v61, %v1531_v35  ;;  %v1491_v6 = vadd.f32 %v4651_v14, %v1431_v23  ;;  %v1432_v16 = vadd.f32 %v1333_v59, %v1129_v44  ;;  %v4743_v9 = vpop.f32.mrf.mxu1 }
 0x1ad   :  { %v1335_v46 = vpop.f32.mrf.mxu0 }
 0x1ae   :  { %v1559_v63 = vmax.f32 %v1558_v50, 0.0  ;;  %v1532_v55 = vmax.f32 %v1490_v25, %v1491_v6  ;;  %v1433_v1 = vadd.f32 %v1335_v46, %v1130_v21  ;;  %v1492_v61 = vadd.f32 %v4647_v58, %v1432_v16 }
 0x1af   :  { %v1339_v29 = vpop.f32.mrf.mxu0  ;;  %v4738_v6 = vld [vmem:[#allocation2 + $0x8] sm:$0xff]  ;;  %v1908_v46 = vsel %vm1740_vm2, %v3345_v36, 0 }
 0x1b0   :  { %1561 = vst.msk [vmem:[#allocation2 + $0x10] sm:$0xff] %vm1552_vm3, %v1559_v63  ;;  %v1493_v32 = vadd.f32 %v4651_v14, %v1433_v1  ;;  %v1434_v20 = vadd.f32 %v1339_v29, %v1131_v33 }
 0x1b1   :  { %v1341_v19 = vpop.f32.mrf.mxu0 }
 0x1b2   :  { %v1533_v56 = vmax.f32 %v1492_v61, %v1493_v32  ;;  %v1435_v3 = vadd.f32 %v1341_v19, %v1132_v48  ;;  %v1494_v35 = vadd.f32 %v4647_v58, %v1434_v20  ;;  %v5364_v48 = vld [vmem:[#allocation31_spill] sm:$0xff]  ;;  %v5365_v20 = vmov 0  }
 0x1b3   :  { %v1343_v18 = vpop.f32.mrf.mxu0  ;;  %v1138_v61 = vadd.f32 %v4616_v31, %v5364_v48  ;;  %v3706_v19 = vld [vmem:[%s5294_s3 + $0x60] ss:$8 sps:$4 sm:$0xff]   ;;  %v3711_v31 = vld [vmem:[%s5294_s3 + $0x54] ss:$8 sps:$4 sm:$0xff]  }
 0x1b4   :  { %v1562_v44 = vmax.f32 %v1532_v55, %v1533_v56  ;;  %v1495_v23 = vadd.f32 %v4651_v14, %v1435_v3  ;;  %v1436_v52 = vadd.f32 %v1343_v18, %v1133_v5  ;;  %v1137_v55 = vadd.f32 %v4605_v13, %v4531_v38  ;;  %v4762_v5 = vpop.f32.mrf.mxu1  ;;  %v5368_v48 = vld [vmem:[#allocation32_spill] sm:$0xff] }
 0x1b5   :  { %v1345_v21 = vpop.f32.mrf.mxu0 }
 0x1b6   :  { %v1563_v4 = vmax.f32 %v1562_v44, 0.0  ;;  %v1534_v59 = vmax.f32 %v1494_v35, %v1495_v23  ;;  %v1437_v50 = vadd.f32 %v1345_v21, %v1134_v43  ;;  %v1496_v33 = vadd.f32 %v4647_v58, %v1436_v52  ;;  %v3709_v35 = vld [vmem:[%s5294_s3 + $0x50] ss:$8 sps:$4 sm:$0xff]   ;;  %v4776_v52 = vpop.f32.mrf.mxu1 }
 0x1b7   :  { %v1349_v25 = vpop.f32.mrf.mxu0  ;;  %v4740_v16 = vld [vmem:[#allocation2 + $0x10] sm:$0xff]  ;;  %v1139_v43 = vadd.f32 %v4626_v10, %v4538_v41  ;;  %v1140_v23 = vadd.f32 %v4643_v47, %v4541_v11  ;;  %v1142_v47 = vadd.f32 %v4665_v40, %v4550_v8 }
 0x1b8   :  { %1565 = vst.msk [vmem:[#allocation2 + $0x18] sm:$0xff] %vm1552_vm3, %v1563_v4  ;;  %v1497_v28 = vadd.f32 %v4651_v14, %v1437_v50  ;;  %v1438_v7 = vadd.f32 %v1349_v25, %v1135_v51  ;;  %v1633_v63 = vpack.c.bf16 %v4740_v16, %v4738_v6  ;;  %v3714_v51 = vld [vmem:[%s5294_s3 + $0x44] ss:$8 sps:$4 sm:$0xff]   ;;  %v3712_v25 = vld [vmem:[%s5294_s3 + $0x40] ss:$8 sps:$4 sm:$0xff]  }
 0x1b9   :  { %v1351_v24 = vpop.f32.mrf.mxu0 }
 0x1ba   :  { %v1535_v1 = vmax.f32 %v1496_v33, %v1497_v28  ;;  %v1439_v29 = vadd.f32 %v1351_v24, %v1136_v15  ;;  %3327 = vmatmul.mubr.msk.bf16.vlgmr.msra.gmra.mxu1 %vm1552_vm3, %v1633_v63  ;;  %v1498_v38 = vadd.f32 %v4647_v58, %v1438_v7 }
 0x1bb   :  { %v1353_v32 = vpop.f32.mrf.mxu0  ;;  %1789 = vmatprep.mubr.bf16.mxu1 %v5365_v20  ;;  %1914 = vmatpush1.bf16.msra.mxu1 %v1908_v46  ;;  %v4791_v46 = vpop.f32.mrf.mxu1 }
 0x1bc   :  { %v1566_v56 = vmax.f32 %v1534_v59, %v1535_v1  ;;  %v1499_v13 = vadd.f32 %v4651_v14, %v1439_v29  ;;  %v1440_v3 = vadd.f32 %v1353_v32, %v1137_v55  ;;  %1915 = vmatprep.subr.bf16.mxu1 %v3708_v12  ;;  %v1141_v59 = vadd.f32 %v4657_v39, %v4548_v54  ;;  %v3717_v54 = vld [vmem:[%s5294_s3 + $0x34] ss:$8 sps:$4 sm:$0xff]   ;;  %v5366_v55 = vld [vmem:[#allocation10_spill] sm:$0xff] }
 0x1bd   :  { %v1355_v45 = vpop.f32.mrf.mxu0  ;;  %v1143_v39 = vadd.f32 %v4674_v53, %v4555_v62  ;;  %v5367_v1 = vld [vmem:[#allocation12_spill] sm:$0xff] }
 0x1be   :  { %v1567_v18 = vmax.f32 %v1566_v56, 0.0  ;;  %v1536_v49 = vmax.f32 %v1498_v38, %v1499_v13  ;;  %v1441_v36 = vadd.f32 %v1355_v45, %v1138_v61  ;;  %v1500_v21 = vadd.f32 %v4647_v58, %v1440_v3  ;;  %v4808_v38 = vpop.f32.mrf.mxu1 }
 0x1bf   :  { %v1359_v44 = vpop.f32.mrf.mxu0  ;;  %1916 = vmatpush1.bf16.msra.mxu1 %v3706_v19  ;;  %v515_v29 = vadd.f32 %v5367_v1, %v5366_v55  ;;  %v1144_v61 = vadd.f32 %v4685_v34, %v5368_v48  ;;  %v4804_v19 = vld [vmem:[#allocation2 + $0x18] sm:$0xff] }
 0x1c0   :  { %1569 = vst.msk [vmem:[#allocation2 + $0x20] sm:$0xff] %vm1552_vm3, %v1567_v18  ;;  %v1501_v41 = vadd.f32 %v4651_v14, %v1441_v36  ;;  %v1442_v10 = vadd.f32 %v1359_v44, %v1139_v43  ;;  %1917 = vmatprep.subr.bf16.mxu1 %v3711_v31  ;;  %v3715_v34 = vld [vmem:[%s5294_s3 + $0x30] ss:$8 sps:$4 sm:$0xff]   ;;  %v5369_v31 = vld [vmem:[#allocation34_spill] sm:$0xff] }
 0x1c1   :  { %v1361_v4 = vpop.f32.mrf.mxu0  ;;  %v843_v45 = vadd.f32 %v5369_v31, %v515_v29  ;;  %v3720_v18 = vld [vmem:[%s5294_s3 + $0x24] ss:$8 sps:$4 sm:$0xff]   ;;  %v5375_v29 = vld [vmem:[#allocation36_spill] sm:$0xff] }
 0x1c2   :  { %v1537_v50 = vmax.f32 %v1500_v21, %v1501_v41  ;;  %v1443_v11 = vadd.f32 %v1361_v4, %v1140_v23  ;;  %v1502_v28 = vadd.f32 %v4647_v58, %v1442_v10  ;;  %v4829_v41 = vpop.f32.mrf.mxu1  ;;  %v1149_v48 = vadd.f32 %v4730_v27, %v5375_v29  ;;  %v3724_v27 = vld [vmem:[%s5294_s3] ss:$8 sps:$4 sm:$0xff]  }
 0x1c3   :  { %v1363_v15 = vpop.f32.mrf.mxu0  ;;  %1918 = vmatpush1.bf16.msra.mxu1 %v3709_v35  ;;  %v1146_v23 = vadd.f32 %v4702_v37, %v843_v45  ;;  %v3723_v37 = vld [vmem:[%s5294_s3 + $0x14] ss:$8 sps:$4 sm:$0xff]  }
 0x1c4   :  { %v1570_v33 = vmax.f32 %v1536_v49, %v1537_v50  ;;  %v1503_v7 = vadd.f32 %v4651_v14, %v1443_v11  ;;  %v1444_v63 = vadd.f32 %v1363_v15, %v1141_v59  ;;  %1919 = vmatprep.subr.bf16.mxu1 %v3714_v51  ;;  %v5370_v49 = vld [vmem:[#allocation33_spill] sm:$0xff]  ;;  %v3718_v59 = vld [vmem:[%s5294_s3 + $0x20] ss:$8 sps:$4 sm:$0xff]   ;;  %v1147_v11 = vadd.f32 %v4711_v2, %v4570_v57 }
 0x1c5   :  { %v1365_v8 = vpop.f32.mrf.mxu0  ;;  %v1145_v36 = vadd.f32 %v4694_v30, %v5370_v49  ;;  %v3721_v57 = vld [vmem:[%s5294_s3 + $0x10] ss:$8 sps:$4 sm:$0xff]  }
 0x1c6   :  { %v1571_v40 = vmax.f32 %v1570_v33, 0.0  ;;  %v1538_v12 = vmax.f32 %v1502_v28, %v1503_v7  ;;  %v1445_v24 = vadd.f32 %v1365_v8, %v1142_v47  ;;  %v1504_v62 = vadd.f32 %v4647_v58, %v1444_v63  ;;  %v5371_v33 = vld [vmem:[#allocation11_spill] sm:$0xff]  ;;  %v5372_v28 = vld [vmem:[#allocation14_spill] sm:$0xff]  ;;  %v5374_v2 = vld [vmem:[#allocation37_spill] sm:$0xff] }
 0x1c7   :  { %v1369_v32 = vpop.f32.mrf.mxu0  ;;  %v4806_v56 = vld [vmem:[#allocation2 + $0x20] sm:$0xff]  ;;  %1920 = vmatpush1.bf16.msra.mxu1 %v3712_v25  ;;  %v525_v7 = vadd.f32 %v5372_v28, %v5371_v33  ;;  %v5380_v33 = vld [vmem:[#allocation39_spill] sm:$0xff] }
 0x1c8   :  { %1573 = vst.msk [vmem:[#allocation2 + $0x28] sm:$0xff] %vm1552_vm3, %v1571_v40  ;;  %v1505_v53 = vadd.f32 %v4651_v14, %v1445_v24  ;;  %v1446_v13 = vadd.f32 %v1369_v32, %v1143_v39  ;;  %v1634_v3 = vpack.c.bf16 %v4806_v56, %v4804_v19  ;;  %1921 = vmatprep.subr.bf16.mxu1 %v3717_v54  ;;  %v5373_v54 = vld [vmem:[#allocation35_spill] sm:$0xff]  ;;  %v4845_v39 = vpop.f32.mrf.mxu1 }
 0x1c9   :  { %v1371_v43 = vpop.f32.mrf.mxu0  ;;  %v1148_v8 = vadd.f32 %v4719_v22, %v5373_v54  ;;  %v847_v55 = vadd.f32 %v5374_v2, %v525_v7  ;;  %v3726_v22 = vld [vmem:[%s5294_s3 + $0x4] ss:$8 sps:$4 sm:$0xff]   ;;  %v1153_v28 = vadd.f32 %v4791_v46, %v5380_v33 }
 0x1ca   :  { %v1539_v44 = vmax.f32 %v1504_v62, %v1505_v53  ;;  %v1447_v35 = vadd.f32 %v1371_v43, %v1144_v61  ;;  %3328 = vmatmul.mubr.msk.bf16.gmra.mxu1 %vm1552_vm3, %v1634_v3  ;;  %3420 = vmatmul.mubr.msk.bf16.vlgmr.msra.gmra.mxu0 %vm1552_vm3, %v1634_v3  ;;  %v1506_v51 = vadd.f32 %v4647_v58, %v1446_v13  ;;  %v4862_v62 = vld [vmem:[%s5294_s3 + $0x160] sm:$0xff]  ;;  %v1100_v3 = vpop.f32.mrf.mxu1 }
 0x1cb   :  { %v1373_v21 = vpop.f32.mrf.mxu0  ;;  %1799 = vmatprep.mubr.bf16.mxu1 %v5365_v20  ;;  %2359 = vmatprep.mubr.bf16.mxu0 %v5365_v20  ;;  %v1150_v53 = vadd.f32 %v4743_v9, %v847_v55  ;;  %v3382_v49 = vcombine.high %v4862_v62, %v4862_v62  ;;  %v1151_v9 = vadd.f32 %v4762_v5, %v4585_v60 }
 0x1cc   :  { %v1574_v10 = vmax.f32 %v1538_v12, %v1539_v44  ;;  %v1507_v30 = vadd.f32 %v4651_v14, %v1447_v35  ;;  %v1448_v4 = vadd.f32 %v1373_v21, %v1145_v36  ;;  %1922 = vmatpush1.bf16.msra.mxu1 %v3715_v34  ;;  %v5377_v21 = vld [vmem:[#allocation16_spill] sm:$0xff]  ;;  %v1155_v55 = vadd.f32 %v4829_v41, %v4600_v42 }
 0x1cd   :  { %v1375_v50 = vpop.f32.mrf.mxu0  ;;  %1923 = vmatprep.subr.bf16.mxu1 %v3720_v18 }
 0x1ce   :  { %v1575_v47 = vmax.f32 %v1574_v10, 0.0  ;;  %v1540_v15 = vmax.f32 %v1506_v51, %v1507_v30  ;;  %v1449_v25 = vadd.f32 %v1375_v50, %v1146_v23  ;;  %v1508_v40 = vadd.f32 %v4647_v58, %v1448_v4  ;;  %v5376_v23 = vld [vmem:[#allocation13_spill] sm:$0xff]  ;;  %v5378_v51 = vld [vmem:[#allocation38_spill] sm:$0xff] }
 0x1cf   :  { %v1379_v63 = vpop.f32.mrf.mxu0  ;;  %v535_v10 = vadd.f32 %v5377_v21, %v5376_v23  ;;  %v1152_v30 = vadd.f32 %v4776_v52, %v5378_v51 }
 0x1d0   :  { %1577 = vst.msk [vmem:[#allocation2 + $0x30] sm:$0xff] %vm1552_vm3, %v1575_v47  ;;  %v1509_v12 = vadd.f32 %v4651_v14, %v1449_v25  ;;  %v1450_v24 = vadd.f32 %v1379_v63, %v1147_v11  ;;  %1924 = vmatpush1.bf16.msra.mxu1 %v3718_v59  ;;  %v4878_v59 = vld [vmem:[#allocation2 + $0x28] sm:$0xff] }
 0x1d1   :  { %v1381_v1 = vpop.f32.mrf.mxu0  ;;  %1925 = vmatprep.subr.bf16.mxu1 %v3723_v37  ;;  %v1102_v37 = vpop.f32.mrf.mxu1 }
 0x1d2   :  { %v1541_v61 = vmax.f32 %v1508_v40, %v1509_v12  ;;  %v1451_v32 = vadd.f32 %v1381_v1, %v1148_v8  ;;  %v1510_v31 = vadd.f32 %v4647_v58, %v1450_v24 }
 0x1d3   :  { %v1383_v13 = vpop.f32.mrf.mxu0  ;;  %v1106_v40 = vpop.f32.mrf.mxu1 }
 0x1d4   :  { %v1578_v34 = vmax.f32 %v1540_v15, %v1541_v61  ;;  %v1511_v45 = vadd.f32 %v4651_v14, %v1451_v32  ;;  %v1452_v43 = vadd.f32 %v1383_v13, %v1149_v48  ;;  %1926 = vmatpush1.bf16.msra.mxu1 %v3721_v57  ;;  %v5379_v15 = vld [vmem:[#allocation40_spill] sm:$0xff]  ;;  %v5382_v48 = vld [vmem:[#allocation17_spill] sm:$0xff] }
 0x1d5   :  { %v1385_v18 = vpop.f32.mrf.mxu0  ;;  %1927 = vmatprep.subr.bf16.mxu1 %v3726_v22  ;;  %v851_v25 = vadd.f32 %v5379_v15, %v535_v10  ;;  %v5387_v15 = vld [vmem:[#allocation19_spill] sm:$0xff] }
 0x1d6   :  { %v1579_v36 = vmax.f32 %v1578_v34, 0.0  ;;  %v1542_v44 = vmax.f32 %v1510_v31, %v1511_v45  ;;  %v1453_v35 = vadd.f32 %v1385_v18, %v1150_v53  ;;  %v1512_v11 = vadd.f32 %v4647_v58, %v1452_v43  ;;  %v5383_v53 = vld [vmem:[#allocation41_spill] sm:$0xff]  ;;  %v1108_v34 = vpop.f32.mrf.mxu1  ;;  %v5385_v18 = vld [vmem:[#allocation42_spill] sm:$0xff] }
 0x1d7   :  { %v1389_v4 = vpop.f32.mrf.mxu0  ;;  %v4880_v50 = vld [vmem:[#allocation2 + $0x30] sm:$0xff]  ;;  %v1154_v54 = vadd.f32 %v4808_v38, %v851_v25  ;;  %v5381_v38 = vld [vmem:[#allocation15_spill] sm:$0xff]  ;;  %v1156_v13 = vadd.f32 %v4845_v39, %v5383_v53  ;;  %v1160_v25 = vadd.f32 %v1108_v34, %v4624_v0  ;;  %v5388_v0 = vld [vmem:[#allocation45_spill] sm:$0xff] }
 0x1d8   :  { %1581 = vst.msk [vmem:[#allocation2 + $0x38] sm:$0xff] %vm1552_vm3, %v1579_v36  ;;  %v1513_v60 = vadd.f32 %v4651_v14, %v1453_v35  ;;  %v1454_v5 = vadd.f32 %v1389_v4, %v1151_v9  ;;  %v1635_v47 = vpack.c.bf16 %v4880_v50, %v4878_v59  ;;  %1928 = vmatpush1.bf16.msra.mxu1 %v3724_v27  ;;  %v5384_v27 = vld [vmem:[#allocation43_spill] sm:$0xff]  ;;  %v1110_v23 = vpop.f32.mrf.mxu1  ;;  %v1598_v53 = vld [vmem:[#allocation2] sm:$0xff] }
 0x1d9   :  { %v1391_v52 = vpop.f32.mrf.mxu0  ;;  %3383 = vmatprep.subr.msk.bf16.mxu1 %vm1740_vm2, %v3382_v49  ;;  %v545_v61 = vadd.f32 %v5382_v48, %v5381_v38  ;;  %v1157_v49 = vadd.f32 %v1100_v3, %v5385_v18  ;;  %v1159_v4 = vadd.f32 %v1106_v40, %v4618_v17 }
 0x1da   :  { %v1543_v7 = vmax.f32 %v1512_v11, %v1513_v60  ;;  %v1455_v63 = vadd.f32 %v1391_v52, %v1152_v30  ;;  %3329 = vmatmul.mubr.msk.bf16.gmra.mxu1 %vm1552_vm3, %v1635_v47  ;;  %3421 = vmatmul.mubr.msk.bf16.gmra.mxu0 %vm1552_vm3, %v1635_v47  ;;  %v1514_v24 = vadd.f32 %v4647_v58, %v1454_v5  ;;  %v5386_v47 = vld [vmem:[#allocation6_spill] sm:$0xff] }
 0x1db   :  { %v1393_v8 = vpop.f32.mrf.mxu0  ;;  %1809 = vmatprep.mubr.bf16.mxu1 %v5365_v20  ;;  %2369 = vmatprep.mubr.bf16.mxu0 %v5365_v20  ;;  %v855_v42 = vadd.f32 %v5384_v27, %v545_v61  ;;  %v555_v3 = vadd.f32 %v5387_v15, %v5386_v47  ;;  %v3729_v27 = vld [vmem:[%s5294_s3 + $0x150] ss:$8 sps:$4 sm:$0xff]   ;;  %v3757_v47 = vld [vmem:[%s5294_s3 + $0x234] ss:$8 sps:$4 sm:$0xff]  }
 0x1dc   :  { %v1582_v12 = vmax.f32 %v1542_v44, %v1543_v7  ;;  %v1515_v57 = vadd.f32 %v4651_v14, %v1455_v63  ;;  %v1456_v46 = vadd.f32 %v1393_v8, %v1153_v28  ;;  %v1112_v28 = vpop.f32.mrf.mxu1  ;;  %v3755_v15 = vld [vmem:[%s5294_s3 + $0x230] ss:$8 sps:$4 sm:$0xff]  }
 0x1dd   :  { %v1395_v2 = vpop.f32.mrf.mxu0  ;;  %v1158_v44 = vadd.f32 %v1102_v37, %v855_v42  ;;  %v859_v8 = vadd.f32 %v4632_v26, %v555_v3  ;;  %v3732_v42 = vld [vmem:[%s5294_s3 + $0x140] ss:$8 sps:$4 sm:$0xff]   ;;  %v3760_v3 = vld [vmem:[%s5294_s3 + $0x224] ss:$8 sps:$4 sm:$0xff]  }
 0x1de   :  { %v1583_v1 = vmax.f32 %v1582_v12, 0.0  ;;  %v1544_v22 = vmax.f32 %v1514_v24, %v1515_v57  ;;  %v1457_v29 = vadd.f32 %v1395_v2, %v1154_v54  ;;  %v1516_v31 = vadd.f32 %v4647_v58, %v1456_v46 }
 0x1df   :  { %v1399_v32 = vpop.f32.mrf.mxu0  ;;  %v4915_v52 = vld [vmem:[#allocation2 + $0x38] sm:$0xff]  ;;  %v1161_v12 = vadd.f32 %v1110_v23, %v5388_v0  ;;  %v1162_v46 = vadd.f32 %v1112_v28, %v859_v8  ;;  %v3766_v28 = vld [vmem:[%s5294_s3 + $0x204] ss:$8 sps:$4 sm:$0xff]  }
 0x1e0   :  { %1585 = vst.msk [vmem:[#allocation2 + $0x40] sm:$0xff] %vm1552_vm3, %v1583_v1  ;;  %v1517_v45 = vadd.f32 %v4651_v14, %v1457_v29  ;;  %v1458_v43 = vadd.f32 %v1399_v32, %v1155_v55  ;;  %v3381_v55 = vcombine.low %v4862_v62, %v4862_v62  ;;  %v1606_v62 = vpack.c.bf16 %v4738_v6, %v1598_v53  ;;  %v3743_v23 = vld [vmem:[%s5294_s3 + $0x114] ss:$8 sps:$4 sm:$0xff]   ;;  %v3772_v8 = vld [vmem:[%s5294_s3 + $0x1e4] ss:$8 sps:$4 sm:$0xff]  }
 0x1e1   :  { %v1401_v41 = vpop.f32.mrf.mxu0 }
 0x1e2   :  { %v1545_v9 = vmax.f32 %v1516_v31, %v1517_v45  ;;  %v1459_v36 = vadd.f32 %v1401_v41, %v1156_v13  ;;  %v1518_v39 = vadd.f32 %v4647_v58, %v1458_v43  ;;  %v2102_v31 = vsel %vm1740_vm2, %v3381_v55, 0  ;;  %v3731_v45 = vld [vmem:[%s5294_s3 + $0x154] ss:$8 sps:$4 sm:$0xff]   ;;  %v3779_v55 = vld [vmem:[%s5296_s5 + $0x8] sm:$0xff]  }
 0x1e3   :  { %v1403_v35 = vpop.f32.mrf.mxu0 }
 0x1e4   :  { %v1586_v21 = vmax.f32 %v1544_v22, %v1545_v9  ;;  %v1519_v10 = vadd.f32 %v4651_v14, %v1459_v36  ;;  %v1460_v51 = vadd.f32 %v1403_v35, %v1157_v49  ;;  %v1607_v49 = vpack.c.bf16 %v4804_v19, %v4740_v16  ;;  %v3737_v36 = vld [vmem:[%s5294_s3 + $0x134] ss:$8 sps:$4 sm:$0xff]   ;;  %v3740_v16 = vld [vmem:[%s5294_s3 + $0x124] ss:$8 sps:$4 sm:$0xff]   ;;  %v3738_v19 = vld [vmem:[%s5294_s3 + $0x120] ss:$8 sps:$4 sm:$0xff]  }
 0x1e5   :  { %v1405_v30 = vpop.f32.mrf.mxu0  ;;  %v4979_v35 = vpack.c.bf16 %v4878_v59, %v4806_v56  ;;  %v3746_v56 = vld [vmem:[%s5294_s3 + $0x104] ss:$8 sps:$4 sm:$0xff]   ;;  %v3744_v59 = vld [vmem:[%s5294_s3 + $0x100] ss:$8 sps:$4 sm:$0xff]  }
 0x1e6   :  { %v1587_v11 = vmax.f32 %v1586_v21, 0.0  ;;  %v1546_v60 = vmax.f32 %v1518_v39, %v1519_v10  ;;  %v1461_v5 = vadd.f32 %v1405_v30, %v1158_v44  ;;  %v1520_v7 = vadd.f32 %v4647_v58, %v1460_v51  ;;  %v3735_v44 = vld [vmem:[%s5294_s3 + $0x130] ss:$8 sps:$4 sm:$0xff]   ;;  %v3749_v10 = vld [vmem:[%s5294_s3 + $0xf4] ss:$8 sps:$4 sm:$0xff]  }
 0x1e7   :  { %v1409_v37 = vpop.f32.mrf.mxu0  ;;  %v4917_v33 = vld [vmem:[#allocation2 + $0x40] sm:$0xff]  ;;  %v3741_v21 = vld [vmem:[%s5294_s3 + $0x110] ss:$8 sps:$4 sm:$0xff]   ;;  %v1609_v39 = vpack.c.bf16 %v4915_v52, %v4880_v50 }
 0x1e8   :  { %1589 = vst.msk [vmem:[#allocation2 + $0x48] sm:$0xff] %vm1552_vm3, %v1587_v11  ;;  %v1521_v17 = vadd.f32 %v4651_v14, %v1461_v5  ;;  %v1462_v63 = vadd.f32 %v1409_v37, %v1159_v4  ;;  %v1636_v54 = vpack.c.bf16 %v4917_v33, %v4915_v52  ;;  %v3438_v51 = vld [vmem:[%s5294_s3 + $0x250] sm:$0xff]  ;;  %v3752_v5 = vld [vmem:[%s5294_s3 + $0x240] ss:$8 sps:$4 sm:$0xff]  }
 0x1e9   :  { %v1411_v40 = vpop.f32.mrf.mxu0  ;;  %v3747_v30 = vld [vmem:[%s5294_s3 + $0xf0] ss:$8 sps:$4 sm:$0xff]   ;;  %v3454_v50 = vcombine.high %v3438_v51, %v3438_v51  ;;  %v3453_v4 = vcombine.low %v3438_v51, %v3438_v51  ;;  %v3763_v37 = vld [vmem:[%s5294_s3 + $0x214] ss:$8 sps:$4 sm:$0xff]  }
 0x1ea   :  { %v1547_v24 = vmax.f32 %v1520_v7, %v1521_v17  ;;  %v1463_v57 = vadd.f32 %v1411_v40, %v1160_v25  ;;  %3330 = vmatmul.mubr.msk.bf16.gmra.mxu1 %vm1552_vm3, %v1636_v54  ;;  %3422 = vmatmul.mubr.msk.bf16.gmra.mxu0 %vm1552_vm3, %v1636_v54  ;;  %v1522_v26 = vadd.f32 %v4647_v58, %v1462_v63  ;;  %v3758_v25 = vld [vmem:[%s5294_s3 + $0x220] ss:$8 sps:$4 sm:$0xff]   ;;  %v3761_v52 = vld [vmem:[%s5294_s3 + $0x210] ss:$8 sps:$4 sm:$0xff]   ;;  %v3769_v17 = vld [vmem:[%s5294_s3 + $0x1f4] ss:$8 sps:$4 sm:$0xff]  }
 0x1eb   :  { %v1413_v2 = vpop.f32.mrf.mxu0  ;;  %1945 = vmatprep.mubr.bf16.mxu1 %v5365_v20  ;;  %2379 = vmatprep.mubr.bf16.mxu0 %v5365_v20  ;;  %v2522_v11 = vsel %vm1740_vm2, %v3453_v4, 0  ;;  %v3764_v7 = vld [vmem:[%s5294_s3 + $0x200] ss:$8 sps:$4 sm:$0xff]   ;;  %v3767_v63 = vld [vmem:[%s5294_s3 + $0x1f0] ss:$8 sps:$4 sm:$0xff]  }
 0x1ec   :  { %v1590_v1 = vmax.f32 %v1546_v60, %v1547_v24  ;;  %v1523_v22 = vadd.f32 %v4651_v14, %v1463_v57  ;;  %v1464_v29 = vadd.f32 %v1413_v2, %v1161_v12  ;;  %v3754_v60 = vld [vmem:[%s5294_s3 + $0x244] ss:$8 sps:$4 sm:$0xff]   ;;  %v3770_v40 = vld [vmem:[%s5294_s3 + $0x1e0] ss:$8 sps:$4 sm:$0xff]   ;;  %v3827_v12 = vmov 0.0   ;;  %v3777_v2 = vld [vmem:[%s5296_s5 + $0x10] sm:$0xff]  }
 0x1ed   :  { %v1415_v38 = vpop.f32.mrf.mxu0  ;;  %3550 = vmatprep.subr.bf16.mxu0 %v3827_v12  ;;  %v3773_v24 = vld [vmem:[%s5296_s5 + $0x48] sm:$0xff]   ;;  %v3774_v57 = vld [vmem:[%s5296_s5 + $0x20] sm:$0xff]  }
 0x1ee   :  { %v1591_v48 = vmax.f32 %v1590_v1, 0.0  ;;  %v1548_v61 = vmax.f32 %v1522_v26, %v1523_v22  ;;  %v1465_v32 = vadd.f32 %v1415_v38, %v1162_v46  ;;  %v1524_v13 = vadd.f32 %v4647_v58, %v1464_v29  ;;  %3551 = vmatpush3.bf16.msra.mxu0 %v3773_v24  ;;  %v3775_v46 = vld [vmem:[%s5296_s5 + $0x40] sm:$0xff]   ;;  %v3778_v26 = vld [vmem:[%s5296_s5 + $0x38] sm:$0xff]   ;;  %v3780_v38 = vld [vmem:[%s5296_s5 + $0x30] sm:$0xff]  }
 0x1ef   :  { %v4953_v41 = vld [vmem:[#allocation2 + $0x48] sm:$0xff]  ;;  %3552 = vmatprep.subr.bf16.mxu0 %v3827_v12  ;;  %v3781_v22 = vld [vmem:[%s5296_s5] sm:$0xff]  }
 0x1f0   :  { %1593 = vst.msk [vmem:[#allocation2 + $0x50] sm:$0xff] %vm1552_vm3, %v1591_v48  ;;  %v1525_v34 = vadd.f32 %v4651_v14, %v1465_v32  ;;  %v3734_v14 = vld [vmem:[%s5294_s3 + $0x144] ss:$8 sps:$4 sm:$0xff]   ;;  %v1997_v54 = vpack.c.bf16 %v4953_v41, %v4917_v33 }
 0x1f2   :  { %v1549_v43 = vmax.f32 %v1524_v13, %v1525_v34  ;;  %3348 = vmatmul.mubr.msk.bf16.vlgmr.msra.gmra.mxu1 %vm1552_vm3, %v1606_v62  ;;  %3553 = vmatpush3.bf16.msra.mxu0 %v3775_v46 }
 0x1f3   :  { %2108 = vmatpush1.bf16.msra.mxu1 %v2102_v31  ;;  %1955 = vmatprep.mubr.bf16.mxu1 %v5365_v20 }
 0x1f4   :  { %v1594_v58 = vmax.f32 %v1548_v61, %v1549_v43  ;;  %2109 = vmatprep.subr.bf16.mxu1 %v3731_v45  ;;  %3554 = vmatprep.subr.bf16.mxu0 %v3827_v12  ;;  %v3782_v61 = vld [vmem:[%s5296_s5 + $0x28] sm:$0xff]  }
 0x1f6   :  { %v1595_v6 = vmax.f32 %v1594_v58, 0.0  ;;  %3555 = vmatpush3.bf16.msra.mxu0 %v3778_v26 }
 0x1f7   :  { %2110 = vmatpush1.bf16.msra.mxu1 %v3729_v27  ;;  %v4955_v18 = vld [vmem:[#allocation2 + $0x50] sm:$0xff]  ;;  %3556 = vmatprep.subr.bf16.mxu0 %v3827_v12 }
 0x1f8   :  { %1597 = vst.msk [vmem:[#allocation2 + $0x58] sm:$0xff] %vm1552_vm3, %v1595_v6  ;;  %2111 = vmatprep.subr.bf16.mxu1 %v3734_v14  ;;  %v2207_v9 = vpack.c.bf16 %v4955_v18, %v4953_v41 }
 0x1fa   :  { %3349 = vmatmul.mubr.msk.bf16.gmra.mxu1 %vm1552_vm3, %v1607_v49  ;;  %3423 = vmatmul.mubr.msk.bf16.gmra.mxu0 %vm1552_vm3, %v2207_v9 }
 0x1fb   :  { %2112 = vmatpush1.bf16.msra.mxu1 %v3732_v42  ;;  %1965 = vmatprep.mubr.bf16.mxu1 %v5365_v20 }
 0x1fc   :  { %2113 = vmatprep.subr.bf16.mxu1 %v3737_v36  ;;  %3560 = vmatprep.mubr.msk.bf16.mxu0 %vm3828_vm4, %v3827_v12 }
 0x1fd   :  { %3557 = vmatpush3.bf16.msra.mxu0 %v3780_v38 }
 0x1fe   :  { %3558 = vmatprep.subr.bf16.mxu0 %v3827_v12 }
 0x1ff   :  { %2114 = vmatpush1.bf16.msra.mxu1 %v3735_v44  ;;  %v2413_v33 = vld [vmem:[#allocation2 + $0x58] sm:$0xff] }
 0x200   :  { %2115 = vmatprep.subr.bf16.mxu1 %v3740_v16  ;;  %v2417_v0 = vpack.c.bf16 %v2413_v33, %v4955_v18 }
 0x201   :  { %3559 = vmatpush3.bf16.msra.mxu0 %v3782_v61 }
 0x202   :  { %3350 = vmatmul.mubr.msk.bf16.gmra.mxu1 %vm1552_vm3, %v4979_v35  ;;  %3578 = vmatprep.subr.bf16.mxu0 %v3827_v12 }
 0x203   :  { %2116 = vmatpush1.bf16.msra.mxu1 %v3738_v19  ;;  %1975 = vmatprep.mubr.bf16.mxu1 %v5365_v20 }
 0x204   :  { %2117 = vmatprep.subr.bf16.mxu1 %v3743_v23 }
 0x207   :  { %2118 = vmatpush1.bf16.msra.mxu1 %v3741_v21 }
 0x208   :  { %2119 = vmatprep.subr.bf16.mxu1 %v3746_v56 }
 0x20a   :  { %3351 = vmatmul.mubr.msk.bf16.gmra.mxu1 %vm1552_vm3, %v1609_v39 }
 0x20b   :  { %2120 = vmatpush1.bf16.msra.mxu1 %v3744_v59  ;;  %2139 = vmatprep.mubr.bf16.mxu1 %v5365_v20 }
 0x20c   :  { %2121 = vmatprep.subr.bf16.mxu1 %v3749_v10 }
 0x20f   :  { %2122 = vmatpush1.bf16.msra.mxu1 %v3747_v30 }
 0x210   :  { %3455 = vmatprep.subr.msk.bf16.mxu1 %vm1740_vm2, %v3454_v50 }
 0x212   :  { %3384 = vmatmul.mubr.msk.bf16.vlgmr.msra.gmra.mxu1 %vm1552_vm3, %v1607_v49 }
 0x213   :  { %2528 = vmatpush1.bf16.msra.mxu1 %v2522_v11  ;;  %2149 = vmatprep.mubr.bf16.mxu1 %v5365_v20 }
 0x214   :  { %2529 = vmatprep.subr.bf16.mxu1 %v3754_v60 }
 0x217   :  { %2530 = vmatpush1.bf16.msra.mxu1 %v3752_v5 }
 0x218   :  { %2531 = vmatprep.subr.bf16.mxu1 %v3757_v47 }
 0x21a   :  { %3385 = vmatmul.mubr.msk.bf16.gmra.mxu1 %vm1552_vm3, %v4979_v35 }
 0x21b   :  { %2532 = vmatpush1.bf16.msra.mxu1 %v3755_v15  ;;  %2159 = vmatprep.mubr.bf16.mxu1 %v5365_v20 }
 0x21c   :  { %2533 = vmatprep.subr.bf16.mxu1 %v3760_v3 }
 0x21f   :  { %2534 = vmatpush1.bf16.msra.mxu1 %v3758_v25 }
 0x220   :  { %2535 = vmatprep.subr.bf16.mxu1 %v3763_v37 }
 0x222   :  { %3386 = vmatmul.mubr.msk.bf16.gmra.mxu1 %vm1552_vm3, %v1609_v39 }
 0x223   :  { %2536 = vmatpush1.bf16.msra.mxu1 %v3761_v52  ;;  %2169 = vmatprep.mubr.bf16.mxu1 %v5365_v20 }
 0x224   :  { %2537 = vmatprep.subr.bf16.mxu1 %v3766_v28 }
 0x227   :  { %2538 = vmatpush1.bf16.msra.mxu1 %v3764_v7 }
 0x228   :  { %2539 = vmatprep.subr.bf16.mxu1 %v3769_v17 }
 0x22a   :  { %3387 = vmatmul.mubr.msk.bf16.gmra.mxu1 %vm1552_vm3, %v1997_v54 }
 0x22b   :  { %2540 = vmatpush1.bf16.msra.mxu1 %v3767_v63  ;;  %2559 = vmatprep.mubr.bf16.mxu1 %v5365_v20 }
 0x22c   :  { %2541 = vmatprep.subr.bf16.mxu1 %v3772_v8 }
 0x22f   :  { %2542 = vmatpush1.bf16.msra.mxu1 %v3770_v40 }
 0x230   :  { %3564 = vmatprep.subr.bf16.mxu1 %v3827_v12 }
 0x232   :  { %3456 = vmatmul.mubr.msk.bf16.vlgmr.msra.gmra.mxu1 %vm1552_vm3, %v4979_v35 }
 0x233   :  { %2569 = vmatprep.mubr.bf16.mxu1 %v5365_v20  ;;  %3565 = vmatpush3.bf16.msra.mxu1 %v3774_v57 }
 0x234   :  { %3566 = vmatprep.subr.bf16.mxu1 %v3827_v12 }
 0x23a   :  { %3457 = vmatmul.mubr.msk.bf16.gmra.mxu1 %vm1552_vm3, %v1609_v39 }
 0x23b   :  { %2579 = vmatprep.mubr.bf16.mxu1 %v5365_v20 }
 0x242   :  { %3458 = vmatmul.mubr.msk.bf16.gmra.mxu1 %vm1552_vm3, %v1997_v54 }
 0x243   :  { %2589 = vmatprep.mubr.bf16.mxu1 %v5365_v20  ;;  %v3776_v20 = vld [vmem:[%s5296_s5 + $0x18] sm:$0xff]  }
 0x244   :  { %3567 = vmatpush3.bf16.msra.mxu1 %v3776_v20 }
 0x245   :  { %3568 = vmatprep.subr.bf16.mxu1 %v3827_v12 }
 0x248   :  { %3569 = vmatpush3.bf16.msra.mxu1 %v3777_v2 }
 0x249   :  { %3570 = vmatprep.subr.bf16.mxu1 %v3827_v12 }
 0x24a   :  { %3459 = vmatmul.mubr.msk.bf16.gmra.mxu1 %vm1552_vm3, %v2417_v0 }
 0x24b   :  { %3574 = vmatprep.mubr.msk.bf16.mxu1 %vm3828_vm4, %v3827_v12 }
 0x24c   :  { %3571 = vmatpush3.bf16.msra.mxu1 %v3779_v55 }
 0x24d   :  { %3572 = vmatprep.subr.bf16.mxu1 %v3827_v12 }
 0x250   :  { %3573 = vmatpush3.bf16.msra.mxu1 %v3781_v22 }
 0x251   :  { %3592 = vmatprep.subr.bf16.mxu1 %v3827_v12 }
 0x27a   :  { %v1781_v1 = vpop.f32.mrf.mxu1 }
 0x27c   :  { %v5106_v29 = vpop.f32.mrf.mxu1 }
 0x27e   :  { %v5117_v48 = vpop.f32.mrf.mxu1 }
 0x280   :  { %v1787_v32 = vpop.f32.mrf.mxu1 }
 0x28a   :  { %v1791_v53 = vpop.f32.mrf.mxu1  ;;  %v2351_v37 = vpop.f32.mrf.mxu0 }
 0x28c   :  { %v5123_v13 = vpop.f32.mrf.mxu1  ;;  %v2353_v7 = vpop.f32.mrf.mxu0 }
 0x28e   :  { %v5125_v34 = vpop.f32.mrf.mxu1  ;;  %v2355_v54 = vpop.f32.mrf.mxu0 }
 0x290   :  { %v5127_v62 = vpop.f32.mrf.mxu1  ;;  %v2357_v33 = vpop.f32.mrf.mxu0 }
 0x29a   :  { %v1801_v31 = vpop.f32.mrf.mxu1  ;;  %v2361_v24 = vpop.f32.mrf.mxu0 }
 0x29c   :  { %v1803_v45 = vpop.f32.mrf.mxu1  ;;  %v2363_v46 = vpop.f32.mrf.mxu0 }
 0x29e   :  { %v1805_v43 = vpop.f32.mrf.mxu1 }
 0x2a0   :  { %v1807_v27 = vpop.f32.mrf.mxu1 }
 0x2aa   :  { %v1811_v58 = vpop.f32.mrf.mxu1 }
 0x2ac   :  { %v5129_v14 = vpop.f32.mrf.mxu1 }
 0x2ae   :  { %v5131_v6 = vpop.f32.mrf.mxu1 }
 0x2b0   :  { %v5133_v42 = vpop.f32.mrf.mxu1 }
 0x2b2   :  { %v1947_v41 = vpop.f32.mrf.mxu1 }
 0x2b3   :  { %v1948_v18 = vadd.f32 %v1947_v41, %v1781_v1  ;;  %v2365_v1 = vpop.f32.mrf.mxu0 }
 0x2b4   :  { %v1949_v49 = vpop.f32.mrf.mxu1 }
 0x2b5   :  { %v1950_v26 = vadd.f32 %v1949_v49, %v5106_v29 }
 0x2b6   :  { %v1951_v9 = vpop.f32.mrf.mxu1 }
 0x2b7   :  { %v1952_v61 = vadd.f32 %v1951_v9, %v5117_v48 }
 0x2b8   :  { %v1953_v36 = vpop.f32.mrf.mxu1 }
 0x2ba   :  { %v1957_v44 = vpop.f32.mrf.mxu1 }
 0x2bb   :  { %v1958_v16 = vadd.f32 %v1957_v44, %v1791_v53 }
 0x2bc   :  { %v1959_v19 = vpop.f32.mrf.mxu1 }
 0x2be   :  { %v1961_v35 = vpop.f32.mrf.mxu1 }
 0x2c0   :  { %v5135_v23 = vpop.f32.mrf.mxu1 }
 0x2c2   :  { %v1967_v21 = vpop.f32.mrf.mxu1 }
 0x2c3   :  { %v5137_v56 = vadd.f32 %v1967_v21, %v1801_v31  ;;  %v1954_v31 = vadd.f32 %v1953_v36, %v1787_v32 }
 0x2c4   :  { %v1969_v59 = vpop.f32.mrf.mxu1 }
 0x2c5   :  { %v5139_v39 = vadd.f32 %v1969_v59, %v1803_v45 }
 0x2c6   :  { %v1971_v10 = vpop.f32.mrf.mxu1 }
 0x2c7   :  { %v5141_v51 = vadd.f32 %v1971_v10, %v1805_v43  ;;  %v2616_v43 = vld [vmem:[%s5295_s4] sm:$0x3] }
 0x2c8   :  { %v1973_v30 = vpop.f32.mrf.mxu1 }
 0x2c9   :  { %v5143_v50 = vadd.f32 %v1973_v30, %v1807_v27  ;;  %v2367_v27 = vpop.f32.mrf.mxu0  ;;  %v1960_v30 = vadd.f32 %v1959_v19, %v5123_v13 }
 0x2ca   :  { %v1977_v4 = vpop.f32.mrf.mxu1 }
 0x2cb   :  { %v5145_v11 = vadd.f32 %v1977_v4, %v1811_v58  ;;  %v2371_v59 = vpop.f32.mrf.mxu0 }
 0x2cc   :  { %v5147_v60 = vpop.f32.mrf.mxu1 }
 0x2ce   :  { %v5149_v5 = vpop.f32.mrf.mxu1 }
 0x2d0   :  { %v5151_v47 = vpop.f32.mrf.mxu1 }
 0x2d2   :  { %v2141_v15 = vpop.f32.mrf.mxu1 }
 0x2d3   :  { %v2180_v22 = vadd.f32 %v2141_v15, %v1948_v18  ;;  %v5389_v18 = vld [vmem:[#allocation44_spill] sm:$0xff] }
 0x2d4   :  { %v2143_v3 = vpop.f32.mrf.mxu1  ;;  %v5390_v49 = vsub.s32 0, %v5389_v18  ;;  %v5391_v32 = vsub.s32 1, %v5389_v18 }
 0x2d5   :  { %v2181_v53 = vadd.f32 %v2143_v3, %v1950_v26  ;;  %v2390_v41 = vadd.f32 %v2351_v37, %v2180_v22  ;;  %v2373_v26 = vpop.f32.mrf.mxu0 }
 0x2d6   :  { %v2145_v25 = vpop.f32.mrf.mxu1  ;;  %v5172_v10 = vrot.slane %v2616_v43, %v5390_v49  ;;  %v5176_v9 = vrot.slane %v2616_v43, %v5391_v32 }
 0x2d7   :  { %v2182_v58 = vadd.f32 %v2145_v25, %v1952_v61  ;;  %v2391_v48 = vadd.f32 %v2353_v7, %v2181_v53  ;;  %v1962_v25 = vadd.f32 %v1961_v35, %v5125_v34  ;;  %v2375_v34 = vpop.f32.mrf.mxu0 }
 0x2d8   :  { %v2147_v52 = vpop.f32.mrf.mxu1 }
 0x2d9   :  { %v2183_v44 = vadd.f32 %v2147_v52, %v1954_v31  ;;  %v2392_v3 = vadd.f32 %v2355_v54, %v2182_v58  ;;  %v1964_v31 = vadd.f32 %v5135_v23, %v5127_v62 }
 0x2da   :  { %v2151_v28 = vpop.f32.mrf.mxu1 }
 0x2db   :  { %v2184_v4 = vadd.f32 %v2151_v28, %v1958_v16  ;;  %v2393_v52 = vadd.f32 %v2357_v33, %v2183_v44 }
 0x2dc   :  { %v2153_v17 = vpop.f32.mrf.mxu1 }
 0x2dd   :  { %v2185_v22 = vadd.f32 %v2153_v17, %v1960_v30  ;;  %v2394_v19 = vadd.f32 %v2361_v24, %v2184_v4  ;;  %v2377_v24 = vpop.f32.mrf.mxu0 }
 0x2de   :  { %v2155_v63 = vpop.f32.mrf.mxu1 }
 0x2df   :  { %v2395_v58 = vadd.f32 %v2363_v46, %v2185_v22  ;;  %v2381_v46 = vpop.f32.mrf.mxu0 }
 0x2e0   :  { %v2157_v8 = vpop.f32.mrf.mxu1 }
 0x2e1   :  { %v2187_v28 = vadd.f32 %v2157_v8, %v1964_v31 }
 0x2e2   :  { %v2161_v40 = vpop.f32.mrf.mxu1 }
 0x2e3   :  { %v2188_v44 = vadd.f32 %v2161_v40, %v5137_v56  ;;  %v2397_v49 = vadd.f32 %v2367_v27, %v2187_v28 }
 0x2e4   :  { %v2163_v0 = vpop.f32.mrf.mxu1 }
 0x2e5   :  { %v2189_v23 = vadd.f32 %v2163_v0, %v5139_v39  ;;  %v2398_v4 = vadd.f32 %v2371_v59, %v2188_v44 }
 0x2e6   :  { %v5153_v57 = vpop.f32.mrf.mxu1 }
 0x2e7   :  { %v2190_v56 = vadd.f32 %v5153_v57, %v5141_v51  ;;  %v2399_v27 = vadd.f32 %v2373_v26, %v2189_v23  ;;  %v1980_v51 = vadd.f32 %v5147_v60, %v5129_v14  ;;  %v3785_v14 = vld [vmem:[%s5296_s5 + $0x90] sm:$0xff]  }
 0x2e8   :  { %v5155_v20 = vpop.f32.mrf.mxu1 }
 0x2e9   :  { %v2191_v39 = vadd.f32 %v5155_v20, %v5143_v50  ;;  %v2383_v20 = vpop.f32.mrf.mxu0 }
 0x2ea   :  { %v5157_v2 = vpop.f32.mrf.mxu1 }
 0x2eb   :  { %v2192_v57 = vadd.f32 %v5157_v2, %v5145_v11 }
 0x2ec   :  { %v5159_v55 = vpop.f32.mrf.mxu1 }
 0x2ee   :  { %v5162_v38 = vpop.f32.mrf.mxu1 }
 0x2f0   :  { %v5165_v45 = vpop.f32.mrf.mxu1 }
 0x2f2   :  { %v2561_v21 = vpop.f32.mrf.mxu1 }
 0x2f3   :  { %v2600_v29 = vadd.f32 %v2561_v21, %v2390_v41  ;;  %v2186_v41 = vadd.f32 %v2155_v63, %v1962_v25 }
 0x2f4   :  { %v2563_v36 = vpop.f32.mrf.mxu1 }
 0x2f5   :  { %v2601_v15 = vadd.f32 %v2563_v36, %v2391_v48  ;;  %v2628_v61 = vadd.f32 %v5172_v10, %v2600_v29  ;;  %v2396_v62 = vadd.f32 %v2365_v1, %v2186_v41 }
 0x2f6   :  { %v2565_v37 = vpop.f32.mrf.mxu1 }
 0x2f7   :  { %v2629_v7 = vadd.f32 %v5176_v9, %v2601_v15  ;;  %v2602_v53 = vadd.f32 %v2565_v37, %v2392_v3  ;;  %v3783_v3 = vld [vmem:[%s5296_s5 + $0x98] sm:$0xff]  }
 0x2f8   :  { %v2567_v43 = vpop.f32.mrf.mxu1 }
 0x2f9   :  { %v2644_v13 = vmax.f32 %v2628_v61, %v2629_v7  ;;  %v2603_v16 = vadd.f32 %v2567_v43, %v2393_v52  ;;  %v2630_v35 = vadd.f32 %v5172_v10, %v2602_v53  ;;  %v2400_v61 = vadd.f32 %v2375_v34, %v2190_v56  ;;  %v3788_v56 = vld [vmem:[%s5296_s5 + $0x60] sm:$0xff]  }
 0x2fa   :  { %v2571_v54 = vpop.f32.mrf.mxu1  ;;  %v1982_v7 = vadd.f32 %v5149_v5, %v5131_v6  ;;  %v2193_v53 = vadd.f32 %v5159_v55, %v1980_v51  ;;  %v2401_v43 = vadd.f32 %v2377_v24, %v2191_v39  ;;  %v1984_v6 = vadd.f32 %v5151_v47, %v5133_v42  ;;  %v3787_v42 = vld [vmem:[%s5296_s5 + $0x88] sm:$0xff]   ;;  %v3794_v51 = vld [vmem:[%s5298_s7 + $0x10] sm:$0xff]  }
 0x2fb   :  { %v2631_v17 = vadd.f32 %v5176_v9, %v2603_v16  ;;  %v2604_v33 = vadd.f32 %v2571_v54, %v2394_v19  ;;  %v2402_v55 = vadd.f32 %v2381_v46, %v2192_v57  ;;  %v3786_v24 = vld [vmem:[%s5296_s5 + $0x68] sm:$0xff]  }
 0x2fc   :  { %v2573_v21 = vpop.f32.mrf.mxu1  ;;  %v2194_v16 = vadd.f32 %v5162_v38, %v1982_v7  ;;  %v2195_v34 = vadd.f32 %v5165_v45, %v1984_v6  ;;  %v3795_v57 = vld [vmem:[%s5298_s7 + $0x8] sm:$0xff]  }
 0x2fd   :  { %v2645_v29 = vmax.f32 %v2630_v35, %v2631_v17  ;;  %v2605_v18 = vadd.f32 %v2573_v21, %v2395_v58  ;;  %v2632_v48 = vadd.f32 %v5172_v10, %v2604_v33  ;;  %v2403_v17 = vadd.f32 %v2383_v20, %v2193_v53  ;;  %v3784_v33 = vld [vmem:[%s5296_s5 + $0x70] sm:$0xff]  }
 0x2fe   :  { %v2575_v63 = vpop.f32.mrf.mxu1 }
 0x2ff   :  { %v2652_v8 = vmax.f32 %v2644_v13, %v2645_v29  ;;  %v2633_v32 = vadd.f32 %v5176_v9, %v2605_v18  ;;  %v2606_v36 = vadd.f32 %v2575_v63, %v2396_v62  ;;  %v2385_v13 = vpop.f32.mrf.mxu0 }
 0x300   :  { %v2577_v30 = vpop.f32.mrf.mxu1  ;;  %v2404_v62 = vadd.f32 %v2385_v13, %v2194_v16 }
 0x301   :  { %v2653_v40 = vmax.f32 %v2652_v8, 0.0  ;;  %v2646_v15 = vmax.f32 %v2632_v48, %v2633_v32  ;;  %v2607_v1 = vadd.f32 %v2577_v30, %v2397_v49  ;;  %v2634_v59 = vadd.f32 %v5172_v10, %v2606_v36  ;;  %v2387_v21 = vpop.f32.mrf.mxu0  ;;  %v3789_v8 = vld [vmem:[%s5296_s5 + $0x80] sm:$0xff]  }
 0x302   :  { %v2581_v0 = vpop.f32.mrf.mxu1  ;;  %v2405_v49 = vadd.f32 %v2387_v21, %v2195_v34 }
 0x303   :  { %v2654_v25 = vpack.c.bf16 %v2653_v40, %v2653_v40  ;;  %v2635_v37 = vadd.f32 %v5176_v9, %v2607_v1  ;;  %v2608_v52 = vadd.f32 %v2581_v0, %v2398_v4  ;;  %v3791_v40 = vld [vmem:[%s5296_s5 + $0x78] sm:$0xff]  }
 0x304   :  { %v2583_v50 = vpop.f32.mrf.mxu1  ;;  %v3790_v0 = vld [vmem:[%s5296_s5 + $0x58] sm:$0xff]  }
 0x305   :  { %v2647_v26 = vmax.f32 %v2634_v59, %v2635_v37  ;;  %v2609_v22 = vadd.f32 %v2583_v50, %v2399_v27  ;;  %3575 = vmatmul.mubr.msk.bf16.vlgmr.msra.gmra.mxu1 %vm2709_vm5, %v2654_v25  ;;  %v2636_v60 = vadd.f32 %v5172_v10, %v2608_v52  ;;  %v3793_v37 = vld [vmem:[%s5298_s7 + $0x18] ss:$0 sps:$4 sm:$0x11]   ;;  %v3796_v50 = vld [vmem:[%s5298_s7] sm:$0xff]  }
 0x306   :  { %v2585_v31 = vpop.f32.mrf.mxu1  ;;  %3593 = vmatpush3.bf16.msra.mxu1 %v3783_v3  ;;  %3602 = vmatprep.mubr.msk.bf16.mxu1 %vm3828_vm4, %v3827_v12  ;;  %v3053_v52 = vsel %vm3051_vm6, %v3793_v37, 0 }
 0x307   :  { %v2665_v11 = vmax.f32 %v2646_v15, %v2647_v26  ;;  %v2637_v2 = vadd.f32 %v5176_v9, %v2609_v22  ;;  %v2610_v41 = vadd.f32 %v2585_v31, %v2400_v61  ;;  %3594 = vmatprep.subr.bf16.mxu1 %v3827_v12 }
 0x308   :  { %v2587_v5 = vpop.f32.mrf.mxu1 }
 0x309   :  { %v2666_v19 = vmax.f32 %v2665_v11, 0.0  ;;  %v2648_v28 = vmax.f32 %v2636_v60, %v2637_v2  ;;  %v2611_v54 = vadd.f32 %v2587_v5, %v2401_v43  ;;  %v2638_v58 = vadd.f32 %v5172_v10, %v2610_v41 }
 0x30a   :  { %v2591_v35 = vpop.f32.mrf.mxu1  ;;  %3595 = vmatpush3.bf16.msra.mxu1 %v3785_v14 }
 0x30b   :  { %v2667_v47 = vpack.c.bf16 %v2666_v19, %v2666_v19  ;;  %v2639_v38 = vadd.f32 %v5176_v9, %v2611_v54  ;;  %v2612_v44 = vadd.f32 %v2591_v35, %v2402_v55  ;;  %3596 = vmatprep.subr.bf16.mxu1 %v3827_v12  ;;  %v3515_v35 = vld [vmem:[%s5299_s8] ss:$0 sm:$0xff] }
 0x30c   :  { %v2593_v45 = vpop.f32.mrf.mxu1 }
 0x30d   :  { %v2649_v29 = vmax.f32 %v2638_v58, %v2639_v38  ;;  %v2613_v18 = vadd.f32 %v2593_v45, %v2403_v17  ;;  %3561 = vmatmul.mubr.msk.bf16.vlgmr.msra.gmra.mxu0 %vm2709_vm5, %v2667_v47  ;;  %v2640_v23 = vadd.f32 %v5172_v10, %v2612_v44 }
 0x30e   :  { %3579 = vmatpush3.bf16.msra.mxu0 %v3784_v33  ;;  %v2595_v63 = vpop.f32.mrf.mxu1  ;;  %3597 = vmatpush3.bf16.msra.mxu1 %v3787_v42 }
 0x30f   :  { %v2826_v48 = vmax.f32 %v2648_v28, %v2649_v29  ;;  %v2641_v32 = vadd.f32 %v5176_v9, %v2613_v18  ;;  %v2614_v36 = vadd.f32 %v2595_v63, %v2404_v62  ;;  %3580 = vmatprep.subr.bf16.mxu0 %v3827_v12  ;;  %3598 = vmatprep.subr.bf16.mxu1 %v3827_v12 }
 0x310   :  { %v2597_v30 = vpop.f32.mrf.mxu1  ;;  %3588 = vmatprep.mubr.msk.bf16.mxu0 %vm3828_vm4, %v3827_v12 }
 0x311   :  { %v2650_v4 = vmax.f32 %v2640_v23, %v2641_v32  ;;  %v2615_v46 = vadd.f32 %v2597_v30, %v2405_v49  ;;  %v2642_v15 = vadd.f32 %v5172_v10, %v2614_v36  ;;  %v3792_v10 = vld [vmem:[%s5296_s5 + $0x50] sm:$0xff]  }
 0x312   :  { %3581 = vmatpush3.bf16.msra.mxu0 %v3786_v24  ;;  %3599 = vmatpush3.bf16.msra.mxu1 %v3789_v8 }
 0x313   :  { %v2643_v1 = vadd.f32 %v5176_v9, %v2615_v46  ;;  %3582 = vmatprep.subr.bf16.mxu0 %v3827_v12  ;;  %3600 = vmatprep.subr.bf16.mxu1 %v3827_v12  ;;  %v2827_v9 = vmax.f32 %v2826_v48, 0.0 }
 0x315   :  { %v2651_v39 = vmax.f32 %v2642_v15, %v2643_v1  ;;  %v2828_v59 = vpack.c.bf16 %v2827_v9, %v2827_v9 }
 0x316   :  { %3583 = vmatpush3.bf16.msra.mxu0 %v3788_v56  ;;  %3601 = vmatpush3.bf16.msra.mxu1 %v3791_v40 }
 0x317   :  { %v2914_v27 = vmax.f32 %v2650_v4, %v2651_v39  ;;  %3584 = vmatprep.subr.bf16.mxu0 %v3827_v12 }
 0x319   :  { %v2915_v3 = vmax.f32 %v2914_v27, 0.0 }
 0x31a   :  { %3585 = vmatpush3.bf16.msra.mxu0 %v3790_v0 }
 0x31b   :  { %v2916_v25 = vpack.c.bf16 %v2915_v3, %v2915_v3  ;;  %3586 = vmatprep.subr.bf16.mxu0 %v3827_v12 }
 0x31d   :  { %3603 = vmatmul.mubr.msk.bf16.vlgmr.msra.gmra.mxu1 %vm2709_vm5, %v2916_v25 }
 0x31e   :  { %3587 = vmatpush3.bf16.msra.mxu0 %v3792_v10 }
 0x31f   :  { %3606 = vmatprep.subr.bf16.mxu0 %v3827_v12 }
 0x321   :  { %3589 = vmatmul.mubr.msk.bf16.vlgmr.msra.gmra.mxu0 %vm2709_vm5, %v2828_v59 }
 0x322   :  { %3614 = vmatprep.mubr.msk.bf16.mxu0 %vm3828_vm4, %v3827_v12  ;;  %3607 = vmatpush3.bf16.msra.mxu0 %v3053_v52 }
 0x323   :  { %3608 = vmatprep.subr.bf16.mxu0 %v3827_v12 }
 0x326   :  { %3609 = vmatpush3.bf16.msra.mxu0 %v3794_v51 }
 0x327   :  { %3610 = vmatprep.subr.bf16.mxu0 %v3827_v12 }
 0x32a   :  { %3611 = vmatpush3.bf16.msra.mxu0 %v3795_v57 }
 0x32b   :  { %3612 = vmatprep.subr.bf16.mxu0 %v3827_v12  ;;  %v3514_v12 = vld [vmem:[%s5297_s6] ss:$0 sm:$0xff] }
 0x32e   :  { %3613 = vmatpush3.bf16.msra.mxu0 %v3796_v50 }
 0x3c5   :  { %v2820_v20 = vpop.f32.mrf.mxu1 }
 0x3c7   :  { %v3576_v26 = vpop.f32.mrf.mxu1 }
 0x3c9   :  { %v2823_v22 = vpop.f32.mrf.mxu1 }
 0x3cb   :  { %v3577_v61 = vpop.f32.mrf.mxu1 }
 0x3cd   :  { %v2747_v7 = vpop.f32.mrf.mxu0 }
 0x3ce   :  { %v2821_v60 = vadd.f32 %v2820_v20, %v2747_v7 }
 0x3cf   :  { %v3562_v53 = vpop.f32.mrf.mxu0 }
 0x3d1   :  { %v2750_v31 = vpop.f32.mrf.mxu0 }
 0x3d3   :  { %v3563_v43 = vpop.f32.mrf.mxu0 }
 0x3dd   :  { %v2995_v14 = vpop.f32.mrf.mxu1 }
 0x3df   :  { %v3604_v11 = vpop.f32.mrf.mxu1 }
 0x3e1   :  { %v2907_v2 = vpop.f32.mrf.mxu0  ;;  %v2998_v41 = vpop.f32.mrf.mxu1 }
 0x3e2   :  { %v2913_v6 = vadd.f32 %v2907_v2, %v2821_v60 }
 0x3e3   :  { %v3590_v5 = vpop.f32.mrf.mxu0  ;;  %v3605_v55 = vpop.f32.mrf.mxu1 }
 0x3e4   :  { %v3001_v13 = vadd.f32 %v2995_v14, %v2913_v6 }
 0x3e5   :  { %v2910_v16 = vpop.f32.mrf.mxu0 }
 0x3e6   :  { %v3009_v19 = vadd.f32 %v3514_v12, %v3001_v13 }
 0x3e7   :  { %v3591_v28 = vpop.f32.mrf.mxu0 }
 0x3e8   :  { %v3010_v54 = vmax.f32 %v3009_v19, 0.0 }
 0x3ea   :  { %v3011_v34 = vpack.c.bf16 %v3010_v54, %v3010_v54 }
 0x3ec   :  { %3615 = vmatmul.mubr.msk.bf16.vlgmr.msra.gmra.mxu0 %vm3047_vm7, %v3011_v34 }
 0x4ac   :  { %v3089_v17 = vpop.f32.mrf.mxu0 }
 0x4ad   :  { %v3090_v33 = vadd.f32 %v3515_v35, %v3089_v17 }
 0x4ae   :  { %v3616_v42 = vpop.f32.mrf.mxu0 }
 0x4af   :  { %v3096_v47 = vsel %vm3095_vm8, %v3090_v33, -inf }
 0x4b0   :  { %3097 = vmax.xlane.f32.xlu0 %v3096_v47  ;;  %v3092_v58 = vpop.f32.mrf.mxu0 }
 0x4b2   :  { %v3617_v38 = vpop.f32.mrf.mxu0 }
 0x539   :  { %v3098_v44 = vpop.xlane.xlu0 %3097 }
 0x53a   :  { %v3099_v45 = vsub.f32 %v3090_v33, %v3098_v44 }
 0x53c   :  { %v3100_v21 = vmul.f32 1.442695, %v3099_v45 }
 0x53e   :  { %3797 = vpow2.f32 %v3100_v21 }
 0x54b   :  { %v3798_v29 = vpop.eup %3797 }
 0x54c   :  { %v3102_v18 = vsel %vm3095_vm8, %v3798_v29, 0.0 }
 0x54d   :  { %3103 = vadd.xlane.f32.xlu0 %v3102_v18 }
 0x5d6   :  { %v3104_v62 = vpop.xlane.xlu0 %3103 }
 0x5d7   :  { %3799 = vlog2.f32 %v3104_v62 }
 0x5e4   :  { %v3800_v23 = vpop.eup %3799 }
 0x5e5   :  { %v3106_v63 = vmul.f32 0.6931472, %v3800_v23 }
 0x5e7   :  { %v3107_v49 = vsub.f32 %v3099_v45, %v3106_v63 }
 0x5e9   :  { %3108 = vst.msk [vmem:[%s5300_s9] sm:$0xff] %vm3095_vm8, %v3107_v49 }
 0x5ea   :  { %3113 = vsyncpa [#allocation4], 1 }

</bundles_post_ra>
